<compile_context>
chip_gen: v7x
topology: tpu7x:2x2x1
jax: 0.10.0
libtpu: 0.0.40
codegen_flags: <defaults>
</compile_context>

<pallas_src>
import functools

import jax
import jax.numpy as jnp
import numpy as np
from jax.experimental import pallas as pl
from jax.experimental.pallas import tpu as pltpu


# ----------------------------------------------------------------------------
# Kernel: fused bidirectional GRU + ReLU + fc_1
# ----------------------------------------------------------------------------
def _gru_head_kernel(x_ref, wih_f_ref, whh_f_ref, bih_f_ref, bhh_f_ref,
                     wih_b_ref, whh_b_ref, bih_b_ref, bhh_b_ref,
                     wout_ref, bout_ref,
                     slab_ref,
                     xproj_f, xproj_b, hseq_f, hseq_b,
                     *, seq_len, batch):
    """Inputs (all f32, time-major flattened rows = t*B + b):
      x_ref     : (N*B, C)
      wih_*_ref : (C, 3H)    bih_*_ref : (1, 3H)     (gate order r|z|n)
      whh_*_ref : (H, 3H)    bhh_*_ref : (1, 3H)
      wout_ref  : (2H, P)  = [ I_(2H) | W_fc^T | 0 ]   (P >= 128, lane dense)
      bout_ref  : (1, P)   = [ 0      | b_fc   | 0 ]
    Output:
      slab_ref  : (N*B, P) = [ relu(h_cat) | fc(relu(h_cat)) | 0 ]
    Scratch:
      xproj_f/b : (N*B, 3H)   hseq_f/b : (N*B, H)
    """
    N, B = seq_len, batch
    H = whh_f_ref.shape[0]

    # ---- input projections: two big lane-dense MXU matmuls over all steps ----
    x2d = x_ref[...]                                                   # (N*B, C)
    xproj_f[...] = jnp.dot(x2d, wih_f_ref[...],
                           preferred_element_type=jnp.float32) + bih_f_ref[...]
    xproj_b[...] = jnp.dot(x2d, wih_b_ref[...],
                           preferred_element_type=jnp.float32) + bih_b_ref[...]

    def gru_step(gi, h, whh_ref, bhh_ref):
        # gi : (B, 3H) precomputed x_t @ W_ih^T + b_ih ; h : (B, H)
        gh = jnp.dot(h, whh_ref[...],
                     preferred_element_type=jnp.float32) + bhh_ref[...]  # (B, 3H)
        r = 1.0 / (1.0 + jnp.exp(-(gi[:, 0:H] + gh[:, 0:H])))
        z = 1.0 / (1.0 + jnp.exp(-(gi[:, H:2 * H] + gh[:, H:2 * H])))
        n = jnp.tanh(gi[:, 2 * H:3 * H] + r * gh[:, 2 * H:3 * H])
        return (1.0 - z) * n + z * h

    # ---- sequential recurrence: forward chain at t, backward chain at N-1-t --
    def body(i, carry):
        h_f, h_b = carry
        rows_f = pl.ds(i * B, B)
        rows_b = pl.ds((N - 1 - i) * B, B)
        h_f = gru_step(xproj_f[rows_f, :], h_f, whh_f_ref, bhh_f_ref)
        h_b = gru_step(xproj_b[rows_b, :], h_b, whh_b_ref, bhh_b_ref)
        hseq_f[rows_f, :] = h_f
        hseq_b[rows_b, :] = h_b
        return (h_f, h_b)

    h0 = jnp.zeros((B, H), jnp.float32)
    jax.lax.fori_loop(0, N, body, (h0, h0), unroll=True)

    # ---- ReLU + fused [identity | fc] projection -> one lane-dense slab ------
    f0 = jnp.maximum(
        jnp.concatenate([hseq_f[...], hseq_b[...]], axis=-1), 0.0)     # (N*B, 2H)
    slab_ref[...] = jnp.dot(f0, wout_ref[...],
                            preferred_element_type=jnp.float32) + bout_ref[...]


_VMEM = pl.BlockSpec(memory_space=pltpu.MemorySpace.VMEM)


def _round_up(v, m):
    return (v + m - 1) // m * m


# ----------------------------------------------------------------------------
# Wrapper (layout glue + pallas_call plumbing)
# ----------------------------------------------------------------------------
def gru_head_forward(x, params):
    """x: (B, N, C) float32.  Mirrors GRU_Head.forward."""
    B, N, C = x.shape
    H = params['w_hh_f'].shape[1]
    NC = params['fc_w'].shape[0]
    P = _round_up(2 * H + NC, 128)          # lane-dense output slab width

    # time-major flattened input: row = t*B + b
    x2d = jnp.transpose(x, (1, 0, 2)).reshape(N * B, C).astype(jnp.float32)

    # PyTorch layout (3H, C)/(3H, H) -> kernel layout (C, 3H)/(H, 3H)
    wih_f = params['w_ih_f'].T
    whh_f = params['w_hh_f'].T
    wih_b = params['w_ih_b'].T
    whh_b = params['w_hh_b'].T
    bih_f = params['b_ih_f'].reshape(1, 3 * H)
    bhh_f = params['b_hh_f'].reshape(1, 3 * H)
    bih_b = params['b_ih_b'].reshape(1, 3 * H)
    bhh_b = params['b_hh_b'].reshape(1, 3 * H)

    # Augmented output projection: slab = [ relu(h) | relu(h) @ W_fc^T + b_fc | 0 ]
    w_out = jnp.zeros((2 * H, P), jnp.float32)
    w_out = w_out.at[:, :2 * H].set(jnp.eye(2 * H, dtype=jnp.float32))
    w_out = w_out.at[:, 2 * H:2 * H + NC].set(params['fc_w'].T)
    b_out = jnp.zeros((1, P), jnp.float32).at[0, 2 * H:2 * H + NC].set(params['fc_b'])

    kernel = functools.partial(_gru_head_kernel, seq_len=N, batch=B)
    slab = pl.pallas_call(
        kernel,
        out_shape=jax.ShapeDtypeStruct((N * B, P), jnp.float32),
        in_specs=[_VMEM] * 11,
        out_specs=_VMEM,
        scratch_shapes=[
            pltpu.VMEM((N * B, 3 * H), jnp.float32),   # x @ W_ih  (forward dir)
            pltpu.VMEM((N * B, 3 * H), jnp.float32),   # x @ W_ih  (backward dir)
            pltpu.VMEM((N * B, H), jnp.float32),       # forward hidden sequence
            pltpu.VMEM((N * B, H), jnp.float32),       # backward hidden sequence
        ],
    )(x2d, wih_f, whh_f, bih_f, bhh_f, wih_b, whh_b, bih_b, bhh_b, w_out, b_out)

    slab = slab.reshape(N, B, P).transpose(1, 0, 2)        # (B, N, P)
    f0 = slab[:, :, :2 * H]                                # feature
    out = slab[:, :, 2 * H:2 * H + NC]                     # logits
    return {'output': out, 'feature': f0}


# ----------------------------------------------------------------------------
# Pure-JAX reference (mirrors PyTorch nn.GRU math, gate order r|z|n)
# ----------------------------------------------------------------------------
def _reference_forward(x, params):
    B, N, C = x.shape
    H = params['w_hh_f'].shape[1]

    def run_dir(xs, w_ih, w_hh, b_ih, b_hh):
        h = jnp.zeros((B, H), jnp.float32)
        hs = []
        for t in range(N):
            gi = xs[:, t, :] @ w_ih.T + b_ih
            gh = h @ w_hh.T + b_hh
            r = jax.nn.sigmoid(gi[:, :H] + gh[:, :H])
            z = jax.nn.sigmoid(gi[:, H:2 * H] + gh[:, H:2 * H])
            n = jnp.tanh(gi[:, 2 * H:] + r * gh[:, 2 * H:])
            h = (1.0 - z) * n + z * h
            hs.append(h)
        return jnp.stack(hs, axis=1)                       # (B, N, H)

    hf = run_dir(x, params['w_ih_f'], params['w_hh_f'],
                 params['b_ih_f'], params['b_hh_f'])
    hb = run_dir(x[:, ::-1, :], params['w_ih_b'], params['w_hh_b'],
                 params['b_ih_b'], params['b_hh_b'])[:, ::-1, :]
    f0 = jnp.maximum(jnp.concatenate([hf, hb], axis=-1), 0.0)
    out = f0 @ params['fc_w'].T + params['fc_b']
    return {'output': out, 'feature': f0}


# ----------------------------------------------------------------------------
# Main
# ----------------------------------------------------------------------------
if __name__ == "__main__":
    B, N, C = 2, 8, 32          # batch, seq, input_dim
    H, NC = 32, 8               # hidden_dim, n_class

    key = jax.random.PRNGKey(0)
    ks = jax.random.split(key, 11)

    def w(k, shape, s=0.2):
        return jax.random.normal(k, shape, jnp.float32) * s

    params = {
        'w_ih_f': w(ks[0], (3 * H, C)), 'w_hh_f': w(ks[1], (3 * H, H)),
        'b_ih_f': w(ks[2], (3 * H,)),   'b_hh_f': w(ks[3], (3 * H,)),
        'w_ih_b': w(ks[4], (3 * H, C)), 'w_hh_b': w(ks[5], (3 * H, H)),
        'b_ih_b': w(ks[6], (3 * H,)),   'b_hh_b': w(ks[7], (3 * H,)),
        'fc_w':   w(ks[8], (NC, 2 * H)), 'fc_b':  w(ks[9], (NC,)),
    }
    x = jax.random.normal(ks[10], (B, N, C), jnp.float32)

    result = gru_head_forward(x, params)
    jax.block_until_ready(result)

    ref = _reference_forward(x, params)
    np.testing.assert_allclose(np.asarray(result['feature']),
                               np.asarray(ref['feature']),
                               rtol=1e-3, atol=1e-3)
    np.testing.assert_allclose(np.asarray(result['output']),
                               np.asarray(ref['output']),
                               rtol=1e-3, atol=1e-3)

    print("KERNEL_OK")
</pallas_src>

<mosaic_0001>
module attributes {stable_mosaic.version = 11 : i64} {
  func.func @_gru_head_kernel(%arg0: memref<16x32xf32, #tpu.memory_space<vmem>>, %arg1: memref<32x96xf32, #tpu.memory_space<vmem>>, %arg2: memref<32x96xf32, #tpu.memory_space<vmem>>, %arg3: memref<1x96xf32, #tpu.memory_space<vmem>>, %arg4: memref<1x96xf32, #tpu.memory_space<vmem>>, %arg5: memref<32x96xf32, #tpu.memory_space<vmem>>, %arg6: memref<32x96xf32, #tpu.memory_space<vmem>>, %arg7: memref<1x96xf32, #tpu.memory_space<vmem>>, %arg8: memref<1x96xf32, #tpu.memory_space<vmem>>, %arg9: memref<64x128xf32, #tpu.memory_space<vmem>>, %arg10: memref<1x128xf32, #tpu.memory_space<vmem>>, %arg11: memref<16x128xf32, #tpu.memory_space<vmem>>, %arg12: memref<16x96xf32, #tpu.memory_space<vmem>>, %arg13: memref<16x96xf32, #tpu.memory_space<vmem>>, %arg14: memref<16x32xf32, #tpu.memory_space<vmem>>, %arg15: memref<16x32xf32, #tpu.memory_space<vmem>>) attributes {dimension_semantics = [], scalar_prefetch = 0 : i64, scratch_operands = 4 : i64, tpu.core_type = #tpu.core_type<tc>} {
    %c0 = arith.constant 0 : index
    %c0_0 = arith.constant 0 : index
    %0 = vector.load %arg0[%c0, %c0_0] : memref<16x32xf32, #tpu.memory_space<vmem>>, vector<16x32xf32>
    %c0_1 = arith.constant 0 : index
    %c0_2 = arith.constant 0 : index
    %1 = vector.load %arg1[%c0_1, %c0_2] : memref<32x96xf32, #tpu.memory_space<vmem>>, vector<32x96xf32>
    %cst = arith.constant dense<0.000000e+00> : vector<16x96xf32>
    %2 = tpu.matmul %0, %1, %cst {dimension_numbers = #tpu.dot_dimension_numbers<[1], [0], [0], [1], [0, 0, 1, 1], [], []>} : vector<16x32xf32>, vector<32x96xf32>, vector<16x96xf32> -> vector<16x96xf32>
    %c0_3 = arith.constant 0 : index
    %c0_4 = arith.constant 0 : index
    %3 = vector.load %arg3[%c0_3, %c0_4] : memref<1x96xf32, #tpu.memory_space<vmem>>, vector<1x96xf32>
    %4 = vector.broadcast %3 : vector<1x96xf32> to vector<16x96xf32>
    %5 = arith.addf %2, %4 : vector<16x96xf32>
    %c0_5 = arith.constant 0 : index
    %c0_6 = arith.constant 0 : index
    %6 = vector.load %arg12[%c0_5, %c0_6] : memref<16x96xf32, #tpu.memory_space<vmem>>, vector<16x96xf32>
    tpu.vector_store %arg12[%c0_5, %c0_6], %5 {strides = array<i32>} : memref<16x96xf32, #tpu.memory_space<vmem>>, vector<16x96xf32>,
    %c0_7 = arith.constant 0 : index
    %c0_8 = arith.constant 0 : index
    %7 = vector.load %arg5[%c0_7, %c0_8] : memref<32x96xf32, #tpu.memory_space<vmem>>, vector<32x96xf32>
    %cst_9 = arith.constant dense<0.000000e+00> : vector<16x96xf32>
    %8 = tpu.matmul %0, %7, %cst_9 {dimension_numbers = #tpu.dot_dimension_numbers<[1], [0], [0], [1], [0, 0, 1, 1], [], []>} : vector<16x32xf32>, vector<32x96xf32>, vector<16x96xf32> -> vector<16x96xf32>
    %c0_10 = arith.constant 0 : index
    %c0_11 = arith.constant 0 : index
    %9 = vector.load %arg7[%c0_10, %c0_11] : memref<1x96xf32, #tpu.memory_space<vmem>>, vector<1x96xf32>
    %10 = vector.broadcast %9 : vector<1x96xf32> to vector<16x96xf32>
    %11 = arith.addf %8, %10 : vector<16x96xf32>
    %c0_12 = arith.constant 0 : index
    %c0_13 = arith.constant 0 : index
    %12 = vector.load %arg13[%c0_12, %c0_13] : memref<16x96xf32, #tpu.memory_space<vmem>>, vector<16x96xf32>
    tpu.vector_store %arg13[%c0_12, %c0_13], %11 {strides = array<i32>} : memref<16x96xf32, #tpu.memory_space<vmem>>, vector<16x96xf32>,
    %cst_14 = arith.constant 0.000000e+00 : f32
    %13 = vector.broadcast %cst_14 : f32 to vector<2x32xf32>
    %c0_i32 = arith.constant 0 : i32
    %c2_i32 = arith.constant 2 : i32
    %14 = arith.muli %c0_i32, %c2_i32 : i32
    %c7_i32 = arith.constant 7 : i32
    %15 = arith.subi %c7_i32, %c0_i32 : i32
    %c2_i32_15 = arith.constant 2 : i32
    %16 = arith.muli %15, %c2_i32_15 : i32
    %17 = arith.index_cast %14 : i32 to index
    %c0_16 = arith.constant 0 : index
    %18 = vector.load %arg12[%17, %c0_16] : memref<16x96xf32, #tpu.memory_space<vmem>>, vector<2x96xf32>
    %c0_17 = arith.constant 0 : index
    %c0_18 = arith.constant 0 : index
    %19 = vector.load %arg2[%c0_17, %c0_18] : memref<32x96xf32, #tpu.memory_space<vmem>>, vector<32x96xf32>
    %cst_19 = arith.constant dense<0.000000e+00> : vector<2x96xf32>
    %20 = tpu.matmul %13, %19, %cst_19 {dimension_numbers = #tpu.dot_dimension_numbers<[1], [0], [0], [1], [0, 0, 1, 1], [], []>} : vector<2x32xf32>, vector<32x96xf32>, vector<2x96xf32> -> vector<2x96xf32>
    %c0_20 = arith.constant 0 : index
    %c0_21 = arith.constant 0 : index
    %21 = vector.load %arg4[%c0_20, %c0_21] : memref<1x96xf32, #tpu.memory_space<vmem>>, vector<1x96xf32>
    %22 = vector.broadcast %21 : vector<1x96xf32> to vector<2x96xf32>
    %23 = arith.addf %20, %22 : vector<2x96xf32>
    %24 = vector.extract_strided_slice %18 {offsets = [0, 0], sizes = [2, 32], strides = [1, 1]} : vector<2x96xf32> to vector<2x32xf32>
    %25 = vector.extract_strided_slice %23 {offsets = [0, 0], sizes = [2, 32], strides = [1, 1]} : vector<2x96xf32> to vector<2x32xf32>
    %26 = arith.addf %24, %25 : vector<2x32xf32>
    %cst_22 = arith.constant 0.000000e+00 : f32
    %27 = vector.broadcast %cst_22 : f32 to vector<2x32xf32>
    %28 = arith.subf %27, %26 : vector<2x32xf32>
    %29 = math.exp %28 : vector<2x32xf32>
    %cst_23 = arith.constant 1.000000e+00 : f32
    %30 = vector.broadcast %cst_23 : f32 to vector<2x32xf32>
    %31 = arith.addf %30, %29 : vector<2x32xf32>
    %cst_24 = arith.constant 1.000000e+00 : f32
    %32 = vector.broadcast %cst_24 : f32 to vector<2x32xf32>
    %33 = arith.divf %32, %31 : vector<2x32xf32>
    %34 = vector.extract_strided_slice %18 {offsets = [0, 32], sizes = [2, 32], strides = [1, 1]} : vector<2x96xf32> to vector<2x32xf32>
    %35 = vector.extract_strided_slice %23 {offsets = [0, 32], sizes = [2, 32], strides = [1, 1]} : vector<2x96xf32> to vector<2x32xf32>
    %36 = arith.addf %34, %35 : vector<2x32xf32>
    %cst_25 = arith.constant 0.000000e+00 : f32
    %37 = vector.broadcast %cst_25 : f32 to vector<2x32xf32>
    %38 = arith.subf %37, %36 : vector<2x32xf32>
    %39 = math.exp %38 : vector<2x32xf32>
    %cst_26 = arith.constant 1.000000e+00 : f32
    %40 = vector.broadcast %cst_26 : f32 to vector<2x32xf32>
    %41 = arith.addf %40, %39 : vector<2x32xf32>
    %cst_27 = arith.constant 1.000000e+00 : f32
    %42 = vector.broadcast %cst_27 : f32 to vector<2x32xf32>
    %43 = arith.divf %42, %41 : vector<2x32xf32>
    %44 = vector.extract_strided_slice %18 {offsets = [0, 64], sizes = [2, 32], strides = [1, 1]} : vector<2x96xf32> to vector<2x32xf32>
    %45 = vector.extract_strided_slice %23 {offsets = [0, 64], sizes = [2, 32], strides = [1, 1]} : vector<2x96xf32> to vector<2x32xf32>
    %46 = arith.mulf %33, %45 : vector<2x32xf32>
    %47 = arith.addf %44, %46 : vector<2x32xf32>
    %48 = math.tanh %47 : vector<2x32xf32>
    %cst_28 = arith.constant 1.000000e+00 : f32
    %49 = vector.broadcast %cst_28 : f32 to vector<2x32xf32>
    %50 = arith.subf %49, %43 : vector<2x32xf32>
    %51 = arith.mulf %50, %48 : vector<2x32xf32>
    %52 = arith.mulf %43, %13 : vector<2x32xf32>
    %53 = arith.addf %51, %52 : vector<2x32xf32>
    %54 = arith.index_cast %16 : i32 to index
    %c0_29 = arith.constant 0 : index
    %55 = vector.load %arg13[%54, %c0_29] : memref<16x96xf32, #tpu.memory_space<vmem>>, vector<2x96xf32>
    %c0_30 = arith.constant 0 : index
    %c0_31 = arith.constant 0 : index
    %56 = vector.load %arg6[%c0_30, %c0_31] : memref<32x96xf32, #tpu.memory_space<vmem>>, vector<32x96xf32>
    %cst_32 = arith.constant dense<0.000000e+00> : vector<2x96xf32>
    %57 = tpu.matmul %13, %56, %cst_32 {dimension_numbers = #tpu.dot_dimension_numbers<[1], [0], [0], [1], [0, 0, 1, 1], [], []>} : vector<2x32xf32>, vector<32x96xf32>, vector<2x96xf32> -> vector<2x96xf32>
    %c0_33 = arith.constant 0 : index
    %c0_34 = arith.constant 0 : index
    %58 = vector.load %arg8[%c0_33, %c0_34] : memref<1x96xf32, #tpu.memory_space<vmem>>, vector<1x96xf32>
    %59 = vector.broadcast %58 : vector<1x96xf32> to vector<2x96xf32>
    %60 = arith.addf %57, %59 : vector<2x96xf32>
    %61 = vector.extract_strided_slice %55 {offsets = [0, 0], sizes = [2, 32], strides = [1, 1]} : vector<2x96xf32> to vector<2x32xf32>
    %62 = vector.extract_strided_slice %60 {offsets = [0, 0], sizes = [2, 32], strides = [1, 1]} : vector<2x96xf32> to vector<2x32xf32>
    %63 = arith.addf %61, %62 : vector<2x32xf32>
    %cst_35 = arith.constant 0.000000e+00 : f32
    %64 = vector.broadcast %cst_35 : f32 to vector<2x32xf32>
    %65 = arith.subf %64, %63 : vector<2x32xf32>
    %66 = math.exp %65 : vector<2x32xf32>
    %cst_36 = arith.constant 1.000000e+00 : f32
    %67 = vector.broadcast %cst_36 : f32 to vector<2x32xf32>
    %68 = arith.addf %67, %66 : vector<2x32xf32>
    %cst_37 = arith.constant 1.000000e+00 : f32
    %69 = vector.broadcast %cst_37 : f32 to vector<2x32xf32>
    %70 = arith.divf %69, %68 : vector<2x32xf32>
    %71 = vector.extract_strided_slice %55 {offsets = [0, 32], sizes = [2, 32], strides = [1, 1]} : vector<2x96xf32> to vector<2x32xf32>
    %72 = vector.extract_strided_slice %60 {offsets = [0, 32], sizes = [2, 32], strides = [1, 1]} : vector<2x96xf32> to vector<2x32xf32>
    %73 = arith.addf %71, %72 : vector<2x32xf32>
    %cst_38 = arith.constant 0.000000e+00 : f32
    %74 = vector.broadcast %cst_38 : f32 to vector<2x32xf32>
    %75 = arith.subf %74, %73 : vector<2x32xf32>
    %76 = math.exp %75 : vector<2x32xf32>
    %cst_39 = arith.constant 1.000000e+00 : f32
    %77 = vector.broadcast %cst_39 : f32 to vector<2x32xf32>
    %78 = arith.addf %77, %76 : vector<2x32xf32>
    %cst_40 = arith.constant 1.000000e+00 : f32
    %79 = vector.broadcast %cst_40 : f32 to vector<2x32xf32>
    %80 = arith.divf %79, %78 : vector<2x32xf32>
    %81 = vector.extract_strided_slice %55 {offsets = [0, 64], sizes = [2, 32], strides = [1, 1]} : vector<2x96xf32> to vector<2x32xf32>
    %82 = vector.extract_strided_slice %60 {offsets = [0, 64], sizes = [2, 32], strides = [1, 1]} : vector<2x96xf32> to vector<2x32xf32>
    %83 = arith.mulf %70, %82 : vector<2x32xf32>
    %84 = arith.addf %81, %83 : vector<2x32xf32>
    %85 = math.tanh %84 : vector<2x32xf32>
    %cst_41 = arith.constant 1.000000e+00 : f32
    %86 = vector.broadcast %cst_41 : f32 to vector<2x32xf32>
    %87 = arith.subf %86, %80 : vector<2x32xf32>
    %88 = arith.mulf %87, %85 : vector<2x32xf32>
    %89 = arith.mulf %80, %13 : vector<2x32xf32>
    %90 = arith.addf %88, %89 : vector<2x32xf32>
    %91 = arith.index_cast %14 : i32 to index
    %c0_42 = arith.constant 0 : index
    %92 = vector.load %arg14[%91, %c0_42] : memref<16x32xf32, #tpu.memory_space<vmem>>, vector<2x32xf32>
    tpu.vector_store %arg14[%91, %c0_42], %53 {strides = array<i32>} : memref<16x32xf32, #tpu.memory_space<vmem>>, vector<2x32xf32>,
    %93 = arith.index_cast %16 : i32 to index
    %c0_43 = arith.constant 0 : index
    %94 = vector.load %arg15[%93, %c0_43] : memref<16x32xf32, #tpu.memory_space<vmem>>, vector<2x32xf32>
    tpu.vector_store %arg15[%93, %c0_43], %90 {strides = array<i32>} : memref<16x32xf32, #tpu.memory_space<vmem>>, vector<2x32xf32>,
    %c1_i32 = arith.constant 1 : i32
    %c2_i32_44 = arith.constant 2 : i32
    %95 = arith.muli %c1_i32, %c2_i32_44 : i32
    %c7_i32_45 = arith.constant 7 : i32
    %96 = arith.subi %c7_i32_45, %c1_i32 : i32
    %c2_i32_46 = arith.constant 2 : i32
    %97 = arith.muli %96, %c2_i32_46 : i32
    %98 = arith.index_cast %95 : i32 to index
    %c0_47 = arith.constant 0 : index
    %99 = vector.load %arg12[%98, %c0_47] : memref<16x96xf32, #tpu.memory_space<vmem>>, vector<2x96xf32>
    %c0_48 = arith.constant 0 : index
    %c0_49 = arith.constant 0 : index
    %100 = vector.load %arg2[%c0_48, %c0_49] : memref<32x96xf32, #tpu.memory_space<vmem>>, vector<32x96xf32>
    %cst_50 = arith.constant dense<0.000000e+00> : vector<2x96xf32>
    %101 = tpu.matmul %53, %100, %cst_50 {dimension_numbers = #tpu.dot_dimension_numbers<[1], [0], [0], [1], [0, 0, 1, 1], [], []>} : vector<2x32xf32>, vector<32x96xf32>, vector<2x96xf32> -> vector<2x96xf32>
    %c0_51 = arith.constant 0 : index
    %c0_52 = arith.constant 0 : index
    %102 = vector.load %arg4[%c0_51, %c0_52] : memref<1x96xf32, #tpu.memory_space<vmem>>, vector<1x96xf32>
    %103 = vector.broadcast %102 : vector<1x96xf32> to vector<2x96xf32>
    %104 = arith.addf %101, %103 : vector<2x96xf32>
    %105 = vector.extract_strided_slice %99 {offsets = [0, 0], sizes = [2, 32], strides = [1, 1]} : vector<2x96xf32> to vector<2x32xf32>
    %106 = vector.extract_strided_slice %104 {offsets = [0, 0], sizes = [2, 32], strides = [1, 1]} : vector<2x96xf32> to vector<2x32xf32>
    %107 = arith.addf %105, %106 : vector<2x32xf32>
    %cst_53 = arith.constant 0.000000e+00 : f32
    %108 = vector.broadcast %cst_53 : f32 to vector<2x32xf32>
    %109 = arith.subf %108, %107 : vector<2x32xf32>
    %110 = math.exp %109 : vector<2x32xf32>
    %cst_54 = arith.constant 1.000000e+00 : f32
    %111 = vector.broadcast %cst_54 : f32 to vector<2x32xf32>
    %112 = arith.addf %111, %110 : vector<2x32xf32>
    %cst_55 = arith.constant 1.000000e+00 : f32
    %113 = vector.broadcast %cst_55 : f32 to vector<2x32xf32>
    %114 = arith.divf %113, %112 : vector<2x32xf32>
    %115 = vector.extract_strided_slice %99 {offsets = [0, 32], sizes = [2, 32], strides = [1, 1]} : vector<2x96xf32> to vector<2x32xf32>
    %116 = vector.extract_strided_slice %104 {offsets = [0, 32], sizes = [2, 32], strides = [1, 1]} : vector<2x96xf32> to vector<2x32xf32>
    %117 = arith.addf %115, %116 : vector<2x32xf32>
    %cst_56 = arith.constant 0.000000e+00 : f32
    %118 = vector.broadcast %cst_56 : f32 to vector<2x32xf32>
    %119 = arith.subf %118, %117 : vector<2x32xf32>
    %120 = math.exp %119 : vector<2x32xf32>
    %cst_57 = arith.constant 1.000000e+00 : f32
    %121 = vector.broadcast %cst_57 : f32 to vector<2x32xf32>
    %122 = arith.addf %121, %120 : vector<2x32xf32>
    %cst_58 = arith.constant 1.000000e+00 : f32
    %123 = vector.broadcast %cst_58 : f32 to vector<2x32xf32>
    %124 = arith.divf %123, %122 : vector<2x32xf32>
    %125 = vector.extract_strided_slice %99 {offsets = [0, 64], sizes = [2, 32], strides = [1, 1]} : vector<2x96xf32> to vector<2x32xf32>
    %126 = vector.extract_strided_slice %104 {offsets = [0, 64], sizes = [2, 32], strides = [1, 1]} : vector<2x96xf32> to vector<2x32xf32>
    %127 = arith.mulf %114, %126 : vector<2x32xf32>
    %128 = arith.addf %125, %127 : vector<2x32xf32>
    %129 = math.tanh %128 : vector<2x32xf32>
    %cst_59 = arith.constant 1.000000e+00 : f32
    %130 = vector.broadcast %cst_59 : f32 to vector<2x32xf32>
    %131 = arith.subf %130, %124 : vector<2x32xf32>
    %132 = arith.mulf %131, %129 : vector<2x32xf32>
    %133 = arith.mulf %124, %53 : vector<2x32xf32>
    %134 = arith.addf %132, %133 : vector<2x32xf32>
    %135 = arith.index_cast %97 : i32 to index
    %c0_60 = arith.constant 0 : index
    %136 = vector.load %arg13[%135, %c0_60] : memref<16x96xf32, #tpu.memory_space<vmem>>, vector<2x96xf32>
    %c0_61 = arith.constant 0 : index
    %c0_62 = arith.constant 0 : index
    %137 = vector.load %arg6[%c0_61, %c0_62] : memref<32x96xf32, #tpu.memory_space<vmem>>, vector<32x96xf32>
    %cst_63 = arith.constant dense<0.000000e+00> : vector<2x96xf32>
    %138 = tpu.matmul %90, %137, %cst_63 {dimension_numbers = #tpu.dot_dimension_numbers<[1], [0], [0], [1], [0, 0, 1, 1], [], []>} : vector<2x32xf32>, vector<32x96xf32>, vector<2x96xf32> -> vector<2x96xf32>
    %c0_64 = arith.constant 0 : index
    %c0_65 = arith.constant 0 : index
    %139 = vector.load %arg8[%c0_64, %c0_65] : memref<1x96xf32, #tpu.memory_space<vmem>>, vector<1x96xf32>
    %140 = vector.broadcast %139 : vector<1x96xf32> to vector<2x96xf32>
    %141 = arith.addf %138, %140 : vector<2x96xf32>
    %142 = vector.extract_strided_slice %136 {offsets = [0, 0], sizes = [2, 32], strides = [1, 1]} : vector<2x96xf32> to vector<2x32xf32>
    %143 = vector.extract_strided_slice %141 {offsets = [0, 0], sizes = [2, 32], strides = [1, 1]} : vector<2x96xf32> to vector<2x32xf32>
    %144 = arith.addf %142, %143 : vector<2x32xf32>
    %cst_66 = arith.constant 0.000000e+00 : f32
    %145 = vector.broadcast %cst_66 : f32 to vector<2x32xf32>
    %146 = arith.subf %145, %144 : vector<2x32xf32>
    %147 = math.exp %146 : vector<2x32xf32>
    %cst_67 = arith.constant 1.000000e+00 : f32
    %148 = vector.broadcast %cst_67 : f32 to vector<2x32xf32>
    %149 = arith.addf %148, %147 : vector<2x32xf32>
    %cst_68 = arith.constant 1.000000e+00 : f32
    %150 = vector.broadcast %cst_68 : f32 to vector<2x32xf32>
    %151 = arith.divf %150, %149 : vector<2x32xf32>
    %152 = vector.extract_strided_slice %136 {offsets = [0, 32], sizes = [2, 32], strides = [1, 1]} : vector<2x96xf32> to vector<2x32xf32>
    %153 = vector.extract_strided_slice %141 {offsets = [0, 32], sizes = [2, 32], strides = [1, 1]} : vector<2x96xf32> to vector<2x32xf32>
    %154 = arith.addf %152, %153 : vector<2x32xf32>
    %cst_69 = arith.constant 0.000000e+00 : f32
    %155 = vector.broadcast %cst_69 : f32 to vector<2x32xf32>
    %156 = arith.subf %155, %154 : vector<2x32xf32>
    %157 = math.exp %156 : vector<2x32xf32>
    %cst_70 = arith.constant 1.000000e+00 : f32
    %158 = vector.broadcast %cst_70 : f32 to vector<2x32xf32>
    %159 = arith.addf %158, %157 : vector<2x32xf32>
    %cst_71 = arith.constant 1.000000e+00 : f32
    %160 = vector.broadcast %cst_71 : f32 to vector<2x32xf32>
    %161 = arith.divf %160, %159 : vector<2x32xf32>
    %162 = vector.extract_strided_slice %136 {offsets = [0, 64], sizes = [2, 32], strides = [1, 1]} : vector<2x96xf32> to vector<2x32xf32>
    %163 = vector.extract_strided_slice %141 {offsets = [0, 64], sizes = [2, 32], strides = [1, 1]} : vector<2x96xf32> to vector<2x32xf32>
    %164 = arith.mulf %151, %163 : vector<2x32xf32>
    %165 = arith.addf %162, %164 : vector<2x32xf32>
    %166 = math.tanh %165 : vector<2x32xf32>
    %cst_72 = arith.constant 1.000000e+00 : f32
    %167 = vector.broadcast %cst_72 : f32 to vector<2x32xf32>
    %168 = arith.subf %167, %161 : vector<2x32xf32>
    %169 = arith.mulf %168, %166 : vector<2x32xf32>
    %170 = arith.mulf %161, %90 : vector<2x32xf32>
    %171 = arith.addf %169, %170 : vector<2x32xf32>
    %172 = arith.index_cast %95 : i32 to index
    %c0_73 = arith.constant 0 : index
    %173 = vector.load %arg14[%172, %c0_73] : memref<16x32xf32, #tpu.memory_space<vmem>>, vector<2x32xf32>
    tpu.vector_store %arg14[%172, %c0_73], %134 {strides = array<i32>} : memref<16x32xf32, #tpu.memory_space<vmem>>, vector<2x32xf32>,
    %174 = arith.index_cast %97 : i32 to index
    %c0_74 = arith.constant 0 : index
    %175 = vector.load %arg15[%174, %c0_74] : memref<16x32xf32, #tpu.memory_space<vmem>>, vector<2x32xf32>
    tpu.vector_store %arg15[%174, %c0_74], %171 {strides = array<i32>} : memref<16x32xf32, #tpu.memory_space<vmem>>, vector<2x32xf32>,
    %c2_i32_75 = arith.constant 2 : i32
    %c2_i32_76 = arith.constant 2 : i32
    %176 = arith.muli %c2_i32_75, %c2_i32_76 : i32
    %c7_i32_77 = arith.constant 7 : i32
    %177 = arith.subi %c7_i32_77, %c2_i32_75 : i32
    %c2_i32_78 = arith.constant 2 : i32
    %178 = arith.muli %177, %c2_i32_78 : i32
    %179 = arith.index_cast %176 : i32 to index
    %c0_79 = arith.constant 0 : index
    %180 = vector.load %arg12[%179, %c0_79] : memref<16x96xf32, #tpu.memory_space<vmem>>, vector<2x96xf32>
    %c0_80 = arith.constant 0 : index
    %c0_81 = arith.constant 0 : index
    %181 = vector.load %arg2[%c0_80, %c0_81] : memref<32x96xf32, #tpu.memory_space<vmem>>, vector<32x96xf32>
    %cst_82 = arith.constant dense<0.000000e+00> : vector<2x96xf32>
    %182 = tpu.matmul %134, %181, %cst_82 {dimension_numbers = #tpu.dot_dimension_numbers<[1], [0], [0], [1], [0, 0, 1, 1], [], []>} : vector<2x32xf32>, vector<32x96xf32>, vector<2x96xf32> -> vector<2x96xf32>
    %c0_83 = arith.constant 0 : index
    %c0_84 = arith.constant 0 : index
    %183 = vector.load %arg4[%c0_83, %c0_84] : memref<1x96xf32, #tpu.memory_space<vmem>>, vector<1x96xf32>
    %184 = vector.broadcast %183 : vector<1x96xf32> to vector<2x96xf32>
    %185 = arith.addf %182, %184 : vector<2x96xf32>
    %186 = vector.extract_strided_slice %180 {offsets = [0, 0], sizes = [2, 32], strides = [1, 1]} : vector<2x96xf32> to vector<2x32xf32>
    %187 = vector.extract_strided_slice %185 {offsets = [0, 0], sizes = [2, 32], strides = [1, 1]} : vector<2x96xf32> to vector<2x32xf32>
    %188 = arith.addf %186, %187 : vector<2x32xf32>
    %cst_85 = arith.constant 0.000000e+00 : f32
    %189 = vector.broadcast %cst_85 : f32 to vector<2x32xf32>
    %190 = arith.subf %189, %188 : vector<2x32xf32>
    %191 = math.exp %190 : vector<2x32xf32>
    %cst_86 = arith.constant 1.000000e+00 : f32
    %192 = vector.broadcast %cst_86 : f32 to vector<2x32xf32>
    %193 = arith.addf %192, %191 : vector<2x32xf32>
    %cst_87 = arith.constant 1.000000e+00 : f32
    %194 = vector.broadcast %cst_87 : f32 to vector<2x32xf32>
    %195 = arith.divf %194, %193 : vector<2x32xf32>
    %196 = vector.extract_strided_slice %180 {offsets = [0, 32], sizes = [2, 32], strides = [1, 1]} : vector<2x96xf32> to vector<2x32xf32>
    %197 = vector.extract_strided_slice %185 {offsets = [0, 32], sizes = [2, 32], strides = [1, 1]} : vector<2x96xf32> to vector<2x32xf32>
    %198 = arith.addf %196, %197 : vector<2x32xf32>
    %cst_88 = arith.constant 0.000000e+00 : f32
    %199 = vector.broadcast %cst_88 : f32 to vector<2x32xf32>
    %200 = arith.subf %199, %198 : vector<2x32xf32>
    %201 = math.exp %200 : vector<2x32xf32>
    %cst_89 = arith.constant 1.000000e+00 : f32
    %202 = vector.broadcast %cst_89 : f32 to vector<2x32xf32>
    %203 = arith.addf %202, %201 : vector<2x32xf32>
    %cst_90 = arith.constant 1.000000e+00 : f32
    %204 = vector.broadcast %cst_90 : f32 to vector<2x32xf32>
    %205 = arith.divf %204, %203 : vector<2x32xf32>
    %206 = vector.extract_strided_slice %180 {offsets = [0, 64], sizes = [2, 32], strides = [1, 1]} : vector<2x96xf32> to vector<2x32xf32>
    %207 = vector.extract_strided_slice %185 {offsets = [0, 64], sizes = [2, 32], strides = [1, 1]} : vector<2x96xf32> to vector<2x32xf32>
    %208 = arith.mulf %195, %207 : vector<2x32xf32>
    %209 = arith.addf %206, %208 : vector<2x32xf32>
    %210 = math.tanh %209 : vector<2x32xf32>
    %cst_91 = arith.constant 1.000000e+00 : f32
    %211 = vector.broadcast %cst_91 : f32 to vector<2x32xf32>
    %212 = arith.subf %211, %205 : vector<2x32xf32>
    %213 = arith.mulf %212, %210 : vector<2x32xf32>
    %214 = arith.mulf %205, %134 : vector<2x32xf32>
    %215 = arith.addf %213, %214 : vector<2x32xf32>
    %216 = arith.index_cast %178 : i32 to index
    %c0_92 = arith.constant 0 : index
    %217 = vector.load %arg13[%216, %c0_92] : memref<16x96xf32, #tpu.memory_space<vmem>>, vector<2x96xf32>
    %c0_93 = arith.constant 0 : index
    %c0_94 = arith.constant 0 : index
    %218 = vector.load %arg6[%c0_93, %c0_94] : memref<32x96xf32, #tpu.memory_space<vmem>>, vector<32x96xf32>
    %cst_95 = arith.constant dense<0.000000e+00> : vector<2x96xf32>
    %219 = tpu.matmul %171, %218, %cst_95 {dimension_numbers = #tpu.dot_dimension_numbers<[1], [0], [0], [1], [0, 0, 1, 1], [], []>} : vector<2x32xf32>, vector<32x96xf32>, vector<2x96xf32> -> vector<2x96xf32>
    %c0_96 = arith.constant 0 : index
    %c0_97 = arith.constant 0 : index
    %220 = vector.load %arg8[%c0_96, %c0_97] : memref<1x96xf32, #tpu.memory_space<vmem>>, vector<1x96xf32>
    %221 = vector.broadcast %220 : vector<1x96xf32> to vector<2x96xf32>
    %222 = arith.addf %219, %221 : vector<2x96xf32>
    %223 = vector.extract_strided_slice %217 {offsets = [0, 0], sizes = [2, 32], strides = [1, 1]} : vector<2x96xf32> to vector<2x32xf32>
    %224 = vector.extract_strided_slice %222 {offsets = [0, 0], sizes = [2, 32], strides = [1, 1]} : vector<2x96xf32> to vector<2x32xf32>
    %225 = arith.addf %223, %224 : vector<2x32xf32>
    %cst_98 = arith.constant 0.000000e+00 : f32
    %226 = vector.broadcast %cst_98 : f32 to vector<2x32xf32>
    %227 = arith.subf %226, %225 : vector<2x32xf32>
    %228 = math.exp %227 : vector<2x32xf32>
    %cst_99 = arith.constant 1.000000e+00 : f32
    %229 = vector.broadcast %cst_99 : f32 to vector<2x32xf32>
    %230 = arith.addf %229, %228 : vector<2x32xf32>
    %cst_100 = arith.constant 1.000000e+00 : f32
    %231 = vector.broadcast %cst_100 : f32 to vector<2x32xf32>
    %232 = arith.divf %231, %230 : vector<2x32xf32>
    %233 = vector.extract_strided_slice %217 {offsets = [0, 32], sizes = [2, 32], strides = [1, 1]} : vector<2x96xf32> to vector<2x32xf32>
    %234 = vector.extract_strided_slice %222 {offsets = [0, 32], sizes = [2, 32], strides = [1, 1]} : vector<2x96xf32> to vector<2x32xf32>
    %235 = arith.addf %233, %234 : vector<2x32xf32>
    %cst_101 = arith.constant 0.000000e+00 : f32
    %236 = vector.broadcast %cst_101 : f32 to vector<2x32xf32>
    %237 = arith.subf %236, %235 : vector<2x32xf32>
    %238 = math.exp %237 : vector<2x32xf32>
    %cst_102 = arith.constant 1.000000e+00 : f32
    %239 = vector.broadcast %cst_102 : f32 to vector<2x32xf32>
    %240 = arith.addf %239, %238 : vector<2x32xf32>
    %cst_103 = arith.constant 1.000000e+00 : f32
    %241 = vector.broadcast %cst_103 : f32 to vector<2x32xf32>
    %242 = arith.divf %241, %240 : vector<2x32xf32>
    %243 = vector.extract_strided_slice %217 {offsets = [0, 64], sizes = [2, 32], strides = [1, 1]} : vector<2x96xf32> to vector<2x32xf32>
    %244 = vector.extract_strided_slice %222 {offsets = [0, 64], sizes = [2, 32], strides = [1, 1]} : vector<2x96xf32> to vector<2x32xf32>
    %245 = arith.mulf %232, %244 : vector<2x32xf32>
    %246 = arith.addf %243, %245 : vector<2x32xf32>
    %247 = math.tanh %246 : vector<2x32xf32>
    %cst_104 = arith.constant 1.000000e+00 : f32
    %248 = vector.broadcast %cst_104 : f32 to vector<2x32xf32>
    %249 = arith.subf %248, %242 : vector<2x32xf32>
    %250 = arith.mulf %249, %247 : vector<2x32xf32>
    %251 = arith.mulf %242, %171 : vector<2x32xf32>
    %252 = arith.addf %250, %251 : vector<2x32xf32>
    %253 = arith.index_cast %176 : i32 to index
    %c0_105 = arith.constant 0 : index
    %254 = vector.load %arg14[%253, %c0_105] : memref<16x32xf32, #tpu.memory_space<vmem>>, vector<2x32xf32>
    tpu.vector_store %arg14[%253, %c0_105], %215 {strides = array<i32>} : memref<16x32xf32, #tpu.memory_space<vmem>>, vector<2x32xf32>,
    %255 = arith.index_cast %178 : i32 to index
    %c0_106 = arith.constant 0 : index
    %256 = vector.load %arg15[%255, %c0_106] : memref<16x32xf32, #tpu.memory_space<vmem>>, vector<2x32xf32>
    tpu.vector_store %arg15[%255, %c0_106], %252 {strides = array<i32>} : memref<16x32xf32, #tpu.memory_space<vmem>>, vector<2x32xf32>,
    %c3_i32 = arith.constant 3 : i32
    %c2_i32_107 = arith.constant 2 : i32
    %257 = arith.muli %c3_i32, %c2_i32_107 : i32
    %c7_i32_108 = arith.constant 7 : i32
    %258 = arith.subi %c7_i32_108, %c3_i32 : i32
    %c2_i32_109 = arith.constant 2 : i32
    %259 = arith.muli %258, %c2_i32_109 : i32
    %260 = arith.index_cast %257 : i32 to index
    %c0_110 = arith.constant 0 : index
    %261 = vector.load %arg12[%260, %c0_110] : memref<16x96xf32, #tpu.memory_space<vmem>>, vector<2x96xf32>
    %c0_111 = arith.constant 0 : index
    %c0_112 = arith.constant 0 : index
    %262 = vector.load %arg2[%c0_111, %c0_112] : memref<32x96xf32, #tpu.memory_space<vmem>>, vector<32x96xf32>
    %cst_113 = arith.constant dense<0.000000e+00> : vector<2x96xf32>
    %263 = tpu.matmul %215, %262, %cst_113 {dimension_numbers = #tpu.dot_dimension_numbers<[1], [0], [0], [1], [0, 0, 1, 1], [], []>} : vector<2x32xf32>, vector<32x96xf32>, vector<2x96xf32> -> vector<2x96xf32>
    %c0_114 = arith.constant 0 : index
    %c0_115 = arith.constant 0 : index
    %264 = vector.load %arg4[%c0_114, %c0_115] : memref<1x96xf32, #tpu.memory_space<vmem>>, vector<1x96xf32>
    %265 = vector.broadcast %264 : vector<1x96xf32> to vector<2x96xf32>
    %266 = arith.addf %263, %265 : vector<2x96xf32>
    %267 = vector.extract_strided_slice %261 {offsets = [0, 0], sizes = [2, 32], strides = [1, 1]} : vector<2x96xf32> to vector<2x32xf32>
    %268 = vector.extract_strided_slice %266 {offsets = [0, 0], sizes = [2, 32], strides = [1, 1]} : vector<2x96xf32> to vector<2x32xf32>
    %269 = arith.addf %267, %268 : vector<2x32xf32>
    %cst_116 = arith.constant 0.000000e+00 : f32
    %270 = vector.broadcast %cst_116 : f32 to vector<2x32xf32>
    %271 = arith.subf %270, %269 : vector<2x32xf32>
    %272 = math.exp %271 : vector<2x32xf32>
    %cst_117 = arith.constant 1.000000e+00 : f32
    %273 = vector.broadcast %cst_117 : f32 to vector<2x32xf32>
    %274 = arith.addf %273, %272 : vector<2x32xf32>
    %cst_118 = arith.constant 1.000000e+00 : f32
    %275 = vector.broadcast %cst_118 : f32 to vector<2x32xf32>
    %276 = arith.divf %275, %274 : vector<2x32xf32>
    %277 = vector.extract_strided_slice %261 {offsets = [0, 32], sizes = [2, 32], strides = [1, 1]} : vector<2x96xf32> to vector<2x32xf32>
    %278 = vector.extract_strided_slice %266 {offsets = [0, 32], sizes = [2, 32], strides = [1, 1]} : vector<2x96xf32> to vector<2x32xf32>
    %279 = arith.addf %277, %278 : vector<2x32xf32>
    %cst_119 = arith.constant 0.000000e+00 : f32
    %280 = vector.broadcast %cst_119 : f32 to vector<2x32xf32>
    %281 = arith.subf %280, %279 : vector<2x32xf32>
    %282 = math.exp %281 : vector<2x32xf32>
    %cst_120 = arith.constant 1.000000e+00 : f32
    %283 = vector.broadcast %cst_120 : f32 to vector<2x32xf32>
    %284 = arith.addf %283, %282 : vector<2x32xf32>
    %cst_121 = arith.constant 1.000000e+00 : f32
    %285 = vector.broadcast %cst_121 : f32 to vector<2x32xf32>
    %286 = arith.divf %285, %284 : vector<2x32xf32>
    %287 = vector.extract_strided_slice %261 {offsets = [0, 64], sizes = [2, 32], strides = [1, 1]} : vector<2x96xf32> to vector<2x32xf32>
    %288 = vector.extract_strided_slice %266 {offsets = [0, 64], sizes = [2, 32], strides = [1, 1]} : vector<2x96xf32> to vector<2x32xf32>
    %289 = arith.mulf %276, %288 : vector<2x32xf32>
    %290 = arith.addf %287, %289 : vector<2x32xf32>
    %291 = math.tanh %290 : vector<2x32xf32>
    %cst_122 = arith.constant 1.000000e+00 : f32
    %292 = vector.broadcast %cst_122 : f32 to vector<2x32xf32>
    %293 = arith.subf %292, %286 : vector<2x32xf32>
    %294 = arith.mulf %293, %291 : vector<2x32xf32>
    %295 = arith.mulf %286, %215 : vector<2x32xf32>
    %296 = arith.addf %294, %295 : vector<2x32xf32>
    %297 = arith.index_cast %259 : i32 to index
    %c0_123 = arith.constant 0 : index
    %298 = vector.load %arg13[%297, %c0_123] : memref<16x96xf32, #tpu.memory_space<vmem>>, vector<2x96xf32>
    %c0_124 = arith.constant 0 : index
    %c0_125 = arith.constant 0 : index
    %299 = vector.load %arg6[%c0_124, %c0_125] : memref<32x96xf32, #tpu.memory_space<vmem>>, vector<32x96xf32>
    %cst_126 = arith.constant dense<0.000000e+00> : vector<2x96xf32>
    %300 = tpu.matmul %252, %299, %cst_126 {dimension_numbers = #tpu.dot_dimension_numbers<[1], [0], [0], [1], [0, 0, 1, 1], [], []>} : vector<2x32xf32>, vector<32x96xf32>, vector<2x96xf32> -> vector<2x96xf32>
    %c0_127 = arith.constant 0 : index
    %c0_128 = arith.constant 0 : index
    %301 = vector.load %arg8[%c0_127, %c0_128] : memref<1x96xf32, #tpu.memory_space<vmem>>, vector<1x96xf32>
    %302 = vector.broadcast %301 : vector<1x96xf32> to vector<2x96xf32>
    %303 = arith.addf %300, %302 : vector<2x96xf32>
    %304 = vector.extract_strided_slice %298 {offsets = [0, 0], sizes = [2, 32], strides = [1, 1]} : vector<2x96xf32> to vector<2x32xf32>
    %305 = vector.extract_strided_slice %303 {offsets = [0, 0], sizes = [2, 32], strides = [1, 1]} : vector<2x96xf32> to vector<2x32xf32>
    %306 = arith.addf %304, %305 : vector<2x32xf32>
    %cst_129 = arith.constant 0.000000e+00 : f32
    %307 = vector.broadcast %cst_129 : f32 to vector<2x32xf32>
    %308 = arith.subf %307, %306 : vector<2x32xf32>
    %309 = math.exp %308 : vector<2x32xf32>
    %cst_130 = arith.constant 1.000000e+00 : f32
    %310 = vector.broadcast %cst_130 : f32 to vector<2x32xf32>
    %311 = arith.addf %310, %309 : vector<2x32xf32>
    %cst_131 = arith.constant 1.000000e+00 : f32
    %312 = vector.broadcast %cst_131 : f32 to vector<2x32xf32>
    %313 = arith.divf %312, %311 : vector<2x32xf32>
    %314 = vector.extract_strided_slice %298 {offsets = [0, 32], sizes = [2, 32], strides = [1, 1]} : vector<2x96xf32> to vector<2x32xf32>
    %315 = vector.extract_strided_slice %303 {offsets = [0, 32], sizes = [2, 32], strides = [1, 1]} : vector<2x96xf32> to vector<2x32xf32>
    %316 = arith.addf %314, %315 : vector<2x32xf32>
    %cst_132 = arith.constant 0.000000e+00 : f32
    %317 = vector.broadcast %cst_132 : f32 to vector<2x32xf32>
    %318 = arith.subf %317, %316 : vector<2x32xf32>
    %319 = math.exp %318 : vector<2x32xf32>
    %cst_133 = arith.constant 1.000000e+00 : f32
    %320 = vector.broadcast %cst_133 : f32 to vector<2x32xf32>
    %321 = arith.addf %320, %319 : vector<2x32xf32>
    %cst_134 = arith.constant 1.000000e+00 : f32
    %322 = vector.broadcast %cst_134 : f32 to vector<2x32xf32>
    %323 = arith.divf %322, %321 : vector<2x32xf32>
    %324 = vector.extract_strided_slice %298 {offsets = [0, 64], sizes = [2, 32], strides = [1, 1]} : vector<2x96xf32> to vector<2x32xf32>
    %325 = vector.extract_strided_slice %303 {offsets = [0, 64], sizes = [2, 32], strides = [1, 1]} : vector<2x96xf32> to vector<2x32xf32>
    %326 = arith.mulf %313, %325 : vector<2x32xf32>
    %327 = arith.addf %324, %326 : vector<2x32xf32>
    %328 = math.tanh %327 : vector<2x32xf32>
    %cst_135 = arith.constant 1.000000e+00 : f32
    %329 = vector.broadcast %cst_135 : f32 to vector<2x32xf32>
    %330 = arith.subf %329, %323 : vector<2x32xf32>
    %331 = arith.mulf %330, %328 : vector<2x32xf32>
    %332 = arith.mulf %323, %252 : vector<2x32xf32>
    %333 = arith.addf %331, %332 : vector<2x32xf32>
    %334 = arith.index_cast %257 : i32 to index
    %c0_136 = arith.constant 0 : index
    %335 = vector.load %arg14[%334, %c0_136] : memref<16x32xf32, #tpu.memory_space<vmem>>, vector<2x32xf32>
    tpu.vector_store %arg14[%334, %c0_136], %296 {strides = array<i32>} : memref<16x32xf32, #tpu.memory_space<vmem>>, vector<2x32xf32>,
    %336 = arith.index_cast %259 : i32 to index
    %c0_137 = arith.constant 0 : index
    %337 = vector.load %arg15[%336, %c0_137] : memref<16x32xf32, #tpu.memory_space<vmem>>, vector<2x32xf32>
    tpu.vector_store %arg15[%336, %c0_137], %333 {strides = array<i32>} : memref<16x32xf32, #tpu.memory_space<vmem>>, vector<2x32xf32>,
    %c4_i32 = arith.constant 4 : i32
    %c2_i32_138 = arith.constant 2 : i32
    %338 = arith.muli %c4_i32, %c2_i32_138 : i32
    %c7_i32_139 = arith.constant 7 : i32
    %339 = arith.subi %c7_i32_139, %c4_i32 : i32
    %c2_i32_140 = arith.constant 2 : i32
    %340 = arith.muli %339, %c2_i32_140 : i32
    %341 = arith.index_cast %338 : i32 to index
    %c0_141 = arith.constant 0 : index
    %342 = vector.load %arg12[%341, %c0_141] : memref<16x96xf32, #tpu.memory_space<vmem>>, vector<2x96xf32>
    %c0_142 = arith.constant 0 : index
    %c0_143 = arith.constant 0 : index
    %343 = vector.load %arg2[%c0_142, %c0_143] : memref<32x96xf32, #tpu.memory_space<vmem>>, vector<32x96xf32>
    %cst_144 = arith.constant dense<0.000000e+00> : vector<2x96xf32>
    %344 = tpu.matmul %296, %343, %cst_144 {dimension_numbers = #tpu.dot_dimension_numbers<[1], [0], [0], [1], [0, 0, 1, 1], [], []>} : vector<2x32xf32>, vector<32x96xf32>, vector<2x96xf32> -> vector<2x96xf32>
    %c0_145 = arith.constant 0 : index
    %c0_146 = arith.constant 0 : index
    %345 = vector.load %arg4[%c0_145, %c0_146] : memref<1x96xf32, #tpu.memory_space<vmem>>, vector<1x96xf32>
    %346 = vector.broadcast %345 : vector<1x96xf32> to vector<2x96xf32>
    %347 = arith.addf %344, %346 : vector<2x96xf32>
    %348 = vector.extract_strided_slice %342 {offsets = [0, 0], sizes = [2, 32], strides = [1, 1]} : vector<2x96xf32> to vector<2x32xf32>
    %349 = vector.extract_strided_slice %347 {offsets = [0, 0], sizes = [2, 32], strides = [1, 1]} : vector<2x96xf32> to vector<2x32xf32>
    %350 = arith.addf %348, %349 : vector<2x32xf32>
    %cst_147 = arith.constant 0.000000e+00 : f32
    %351 = vector.broadcast %cst_147 : f32 to vector<2x32xf32>
    %352 = arith.subf %351, %350 : vector<2x32xf32>
    %353 = math.exp %352 : vector<2x32xf32>
    %cst_148 = arith.constant 1.000000e+00 : f32
    %354 = vector.broadcast %cst_148 : f32 to vector<2x32xf32>
    %355 = arith.addf %354, %353 : vector<2x32xf32>
    %cst_149 = arith.constant 1.000000e+00 : f32
    %356 = vector.broadcast %cst_149 : f32 to vector<2x32xf32>
    %357 = arith.divf %356, %355 : vector<2x32xf32>
    %358 = vector.extract_strided_slice %342 {offsets = [0, 32], sizes = [2, 32], strides = [1, 1]} : vector<2x96xf32> to vector<2x32xf32>
    %359 = vector.extract_strided_slice %347 {offsets = [0, 32], sizes = [2, 32], strides = [1, 1]} : vector<2x96xf32> to vector<2x32xf32>
    %360 = arith.addf %358, %359 : vector<2x32xf32>
    %cst_150 = arith.constant 0.000000e+00 : f32
    %361 = vector.broadcast %cst_150 : f32 to vector<2x32xf32>
    %362 = arith.subf %361, %360 : vector<2x32xf32>
    %363 = math.exp %362 : vector<2x32xf32>
    %cst_151 = arith.constant 1.000000e+00 : f32
    %364 = vector.broadcast %cst_151 : f32 to vector<2x32xf32>
    %365 = arith.addf %364, %363 : vector<2x32xf32>
    %cst_152 = arith.constant 1.000000e+00 : f32
    %366 = vector.broadcast %cst_152 : f32 to vector<2x32xf32>
    %367 = arith.divf %366, %365 : vector<2x32xf32>
    %368 = vector.extract_strided_slice %342 {offsets = [0, 64], sizes = [2, 32], strides = [1, 1]} : vector<2x96xf32> to vector<2x32xf32>
    %369 = vector.extract_strided_slice %347 {offsets = [0, 64], sizes = [2, 32], strides = [1, 1]} : vector<2x96xf32> to vector<2x32xf32>
    %370 = arith.mulf %357, %369 : vector<2x32xf32>
    %371 = arith.addf %368, %370 : vector<2x32xf32>
    %372 = math.tanh %371 : vector<2x32xf32>
    %cst_153 = arith.constant 1.000000e+00 : f32
    %373 = vector.broadcast %cst_153 : f32 to vector<2x32xf32>
    %374 = arith.subf %373, %367 : vector<2x32xf32>
    %375 = arith.mulf %374, %372 : vector<2x32xf32>
    %376 = arith.mulf %367, %296 : vector<2x32xf32>
    %377 = arith.addf %375, %376 : vector<2x32xf32>
    %378 = arith.index_cast %340 : i32 to index
    %c0_154 = arith.constant 0 : index
    %379 = vector.load %arg13[%378, %c0_154] : memref<16x96xf32, #tpu.memory_space<vmem>>, vector<2x96xf32>
    %c0_155 = arith.constant 0 : index
    %c0_156 = arith.constant 0 : index
    %380 = vector.load %arg6[%c0_155, %c0_156] : memref<32x96xf32, #tpu.memory_space<vmem>>, vector<32x96xf32>
    %cst_157 = arith.constant dense<0.000000e+00> : vector<2x96xf32>
    %381 = tpu.matmul %333, %380, %cst_157 {dimension_numbers = #tpu.dot_dimension_numbers<[1], [0], [0], [1], [0, 0, 1, 1], [], []>} : vector<2x32xf32>, vector<32x96xf32>, vector<2x96xf32> -> vector<2x96xf32>
    %c0_158 = arith.constant 0 : index
    %c0_159 = arith.constant 0 : index
    %382 = vector.load %arg8[%c0_158, %c0_159] : memref<1x96xf32, #tpu.memory_space<vmem>>, vector<1x96xf32>
    %383 = vector.broadcast %382 : vector<1x96xf32> to vector<2x96xf32>
    %384 = arith.addf %381, %383 : vector<2x96xf32>
    %385 = vector.extract_strided_slice %379 {offsets = [0, 0], sizes = [2, 32], strides = [1, 1]} : vector<2x96xf32> to vector<2x32xf32>
    %386 = vector.extract_strided_slice %384 {offsets = [0, 0], sizes = [2, 32], strides = [1, 1]} : vector<2x96xf32> to vector<2x32xf32>
    %387 = arith.addf %385, %386 : vector<2x32xf32>
    %cst_160 = arith.constant 0.000000e+00 : f32
    %388 = vector.broadcast %cst_160 : f32 to vector<2x32xf32>
    %389 = arith.subf %388, %387 : vector<2x32xf32>
    %390 = math.exp %389 : vector<2x32xf32>
    %cst_161 = arith.constant 1.000000e+00 : f32
    %391 = vector.broadcast %cst_161 : f32 to vector<2x32xf32>
    %392 = arith.addf %391, %390 : vector<2x32xf32>
    %cst_162 = arith.constant 1.000000e+00 : f32
    %393 = vector.broadcast %cst_162 : f32 to vector<2x32xf32>
    %394 = arith.divf %393, %392 : vector<2x32xf32>
    %395 = vector.extract_strided_slice %379 {offsets = [0, 32], sizes = [2, 32], strides = [1, 1]} : vector<2x96xf32> to vector<2x32xf32>
    %396 = vector.extract_strided_slice %384 {offsets = [0, 32], sizes = [2, 32], strides = [1, 1]} : vector<2x96xf32> to vector<2x32xf32>
    %397 = arith.addf %395, %396 : vector<2x32xf32>
    %cst_163 = arith.constant 0.000000e+00 : f32
    %398 = vector.broadcast %cst_163 : f32 to vector<2x32xf32>
    %399 = arith.subf %398, %397 : vector<2x32xf32>
    %400 = math.exp %399 : vector<2x32xf32>
    %cst_164 = arith.constant 1.000000e+00 : f32
    %401 = vector.broadcast %cst_164 : f32 to vector<2x32xf32>
    %402 = arith.addf %401, %400 : vector<2x32xf32>
    %cst_165 = arith.constant 1.000000e+00 : f32
    %403 = vector.broadcast %cst_165 : f32 to vector<2x32xf32>
    %404 = arith.divf %403, %402 : vector<2x32xf32>
    %405 = vector.extract_strided_slice %379 {offsets = [0, 64], sizes = [2, 32], strides = [1, 1]} : vector<2x96xf32> to vector<2x32xf32>
    %406 = vector.extract_strided_slice %384 {offsets = [0, 64], sizes = [2, 32], strides = [1, 1]} : vector<2x96xf32> to vector<2x32xf32>
    %407 = arith.mulf %394, %406 : vector<2x32xf32>
    %408 = arith.addf %405, %407 : vector<2x32xf32>
    %409 = math.tanh %408 : vector<2x32xf32>
    %cst_166 = arith.constant 1.000000e+00 : f32
    %410 = vector.broadcast %cst_166 : f32 to vector<2x32xf32>
    %411 = arith.subf %410, %404 : vector<2x32xf32>
    %412 = arith.mulf %411, %409 : vector<2x32xf32>
    %413 = arith.mulf %404, %333 : vector<2x32xf32>
    %414 = arith.addf %412, %413 : vector<2x32xf32>
    %415 = arith.index_cast %338 : i32 to index
    %c0_167 = arith.constant 0 : index
    %416 = vector.load %arg14[%415, %c0_167] : memref<16x32xf32, #tpu.memory_space<vmem>>, vector<2x32xf32>
    tpu.vector_store %arg14[%415, %c0_167], %377 {strides = array<i32>} : memref<16x32xf32, #tpu.memory_space<vmem>>, vector<2x32xf32>,
    %417 = arith.index_cast %340 : i32 to index
    %c0_168 = arith.constant 0 : index
    %418 = vector.load %arg15[%417, %c0_168] : memref<16x32xf32, #tpu.memory_space<vmem>>, vector<2x32xf32>
    tpu.vector_store %arg15[%417, %c0_168], %414 {strides = array<i32>} : memref<16x32xf32, #tpu.memory_space<vmem>>, vector<2x32xf32>,
    %c5_i32 = arith.constant 5 : i32
    %c2_i32_169 = arith.constant 2 : i32
    %419 = arith.muli %c5_i32, %c2_i32_169 : i32
    %c7_i32_170 = arith.constant 7 : i32
    %420 = arith.subi %c7_i32_170, %c5_i32 : i32
    %c2_i32_171 = arith.constant 2 : i32
    %421 = arith.muli %420, %c2_i32_171 : i32
    %422 = arith.index_cast %419 : i32 to index
    %c0_172 = arith.constant 0 : index
    %423 = vector.load %arg12[%422, %c0_172] : memref<16x96xf32, #tpu.memory_space<vmem>>, vector<2x96xf32>
    %c0_173 = arith.constant 0 : index
    %c0_174 = arith.constant 0 : index
    %424 = vector.load %arg2[%c0_173, %c0_174] : memref<32x96xf32, #tpu.memory_space<vmem>>, vector<32x96xf32>
    %cst_175 = arith.constant dense<0.000000e+00> : vector<2x96xf32>
    %425 = tpu.matmul %377, %424, %cst_175 {dimension_numbers = #tpu.dot_dimension_numbers<[1], [0], [0], [1], [0, 0, 1, 1], [], []>} : vector<2x32xf32>, vector<32x96xf32>, vector<2x96xf32> -> vector<2x96xf32>
    %c0_176 = arith.constant 0 : index
    %c0_177 = arith.constant 0 : index
    %426 = vector.load %arg4[%c0_176, %c0_177] : memref<1x96xf32, #tpu.memory_space<vmem>>, vector<1x96xf32>
    %427 = vector.broadcast %426 : vector<1x96xf32> to vector<2x96xf32>
    %428 = arith.addf %425, %427 : vector<2x96xf32>
    %429 = vector.extract_strided_slice %423 {offsets = [0, 0], sizes = [2, 32], strides = [1, 1]} : vector<2x96xf32> to vector<2x32xf32>
    %430 = vector.extract_strided_slice %428 {offsets = [0, 0], sizes = [2, 32], strides = [1, 1]} : vector<2x96xf32> to vector<2x32xf32>
    %431 = arith.addf %429, %430 : vector<2x32xf32>
    %cst_178 = arith.constant 0.000000e+00 : f32
    %432 = vector.broadcast %cst_178 : f32 to vector<2x32xf32>
    %433 = arith.subf %432, %431 : vector<2x32xf32>
    %434 = math.exp %433 : vector<2x32xf32>
    %cst_179 = arith.constant 1.000000e+00 : f32
    %435 = vector.broadcast %cst_179 : f32 to vector<2x32xf32>
    %436 = arith.addf %435, %434 : vector<2x32xf32>
    %cst_180 = arith.constant 1.000000e+00 : f32
    %437 = vector.broadcast %cst_180 : f32 to vector<2x32xf32>
    %438 = arith.divf %437, %436 : vector<2x32xf32>
    %439 = vector.extract_strided_slice %423 {offsets = [0, 32], sizes = [2, 32], strides = [1, 1]} : vector<2x96xf32> to vector<2x32xf32>
    %440 = vector.extract_strided_slice %428 {offsets = [0, 32], sizes = [2, 32], strides = [1, 1]} : vector<2x96xf32> to vector<2x32xf32>
    %441 = arith.addf %439, %440 : vector<2x32xf32>
    %cst_181 = arith.constant 0.000000e+00 : f32
    %442 = vector.broadcast %cst_181 : f32 to vector<2x32xf32>
    %443 = arith.subf %442, %441 : vector<2x32xf32>
    %444 = math.exp %443 : vector<2x32xf32>
    %cst_182 = arith.constant 1.000000e+00 : f32
    %445 = vector.broadcast %cst_182 : f32 to vector<2x32xf32>
    %446 = arith.addf %445, %444 : vector<2x32xf32>
    %cst_183 = arith.constant 1.000000e+00 : f32
    %447 = vector.broadcast %cst_183 : f32 to vector<2x32xf32>
    %448 = arith.divf %447, %446 : vector<2x32xf32>
    %449 = vector.extract_strided_slice %423 {offsets = [0, 64], sizes = [2, 32], strides = [1, 1]} : vector<2x96xf32> to vector<2x32xf32>
    %450 = vector.extract_strided_slice %428 {offsets = [0, 64], sizes = [2, 32], strides = [1, 1]} : vector<2x96xf32> to vector<2x32xf32>
    %451 = arith.mulf %438, %450 : vector<2x32xf32>
    %452 = arith.addf %449, %451 : vector<2x32xf32>
    %453 = math.tanh %452 : vector<2x32xf32>
    %cst_184 = arith.constant 1.000000e+00 : f32
    %454 = vector.broadcast %cst_184 : f32 to vector<2x32xf32>
    %455 = arith.subf %454, %448 : vector<2x32xf32>
    %456 = arith.mulf %455, %453 : vector<2x32xf32>
    %457 = arith.mulf %448, %377 : vector<2x32xf32>
    %458 = arith.addf %456, %457 : vector<2x32xf32>
    %459 = arith.index_cast %421 : i32 to index
    %c0_185 = arith.constant 0 : index
    %460 = vector.load %arg13[%459, %c0_185] : memref<16x96xf32, #tpu.memory_space<vmem>>, vector<2x96xf32>
    %c0_186 = arith.constant 0 : index
    %c0_187 = arith.constant 0 : index
    %461 = vector.load %arg6[%c0_186, %c0_187] : memref<32x96xf32, #tpu.memory_space<vmem>>, vector<32x96xf32>
    %cst_188 = arith.constant dense<0.000000e+00> : vector<2x96xf32>
    %462 = tpu.matmul %414, %461, %cst_188 {dimension_numbers = #tpu.dot_dimension_numbers<[1], [0], [0], [1], [0, 0, 1, 1], [], []>} : vector<2x32xf32>, vector<32x96xf32>, vector<2x96xf32> -> vector<2x96xf32>
    %c0_189 = arith.constant 0 : index
    %c0_190 = arith.constant 0 : index
    %463 = vector.load %arg8[%c0_189, %c0_190] : memref<1x96xf32, #tpu.memory_space<vmem>>, vector<1x96xf32>
    %464 = vector.broadcast %463 : vector<1x96xf32> to vector<2x96xf32>
    %465 = arith.addf %462, %464 : vector<2x96xf32>
    %466 = vector.extract_strided_slice %460 {offsets = [0, 0], sizes = [2, 32], strides = [1, 1]} : vector<2x96xf32> to vector<2x32xf32>
    %467 = vector.extract_strided_slice %465 {offsets = [0, 0], sizes = [2, 32], strides = [1, 1]} : vector<2x96xf32> to vector<2x32xf32>
    %468 = arith.addf %466, %467 : vector<2x32xf32>
    %cst_191 = arith.constant 0.000000e+00 : f32
    %469 = vector.broadcast %cst_191 : f32 to vector<2x32xf32>
    %470 = arith.subf %469, %468 : vector<2x32xf32>
    %471 = math.exp %470 : vector<2x32xf32>
    %cst_192 = arith.constant 1.000000e+00 : f32
    %472 = vector.broadcast %cst_192 : f32 to vector<2x32xf32>
    %473 = arith.addf %472, %471 : vector<2x32xf32>
    %cst_193 = arith.constant 1.000000e+00 : f32
    %474 = vector.broadcast %cst_193 : f32 to vector<2x32xf32>
    %475 = arith.divf %474, %473 : vector<2x32xf32>
    %476 = vector.extract_strided_slice %460 {offsets = [0, 32], sizes = [2, 32], strides = [1, 1]} : vector<2x96xf32> to vector<2x32xf32>
    %477 = vector.extract_strided_slice %465 {offsets = [0, 32], sizes = [2, 32], strides = [1, 1]} : vector<2x96xf32> to vector<2x32xf32>
    %478 = arith.addf %476, %477 : vector<2x32xf32>
    %cst_194 = arith.constant 0.000000e+00 : f32
    %479 = vector.broadcast %cst_194 : f32 to vector<2x32xf32>
    %480 = arith.subf %479, %478 : vector<2x32xf32>
    %481 = math.exp %480 : vector<2x32xf32>
    %cst_195 = arith.constant 1.000000e+00 : f32
    %482 = vector.broadcast %cst_195 : f32 to vector<2x32xf32>
    %483 = arith.addf %482, %481 : vector<2x32xf32>
    %cst_196 = arith.constant 1.000000e+00 : f32
    %484 = vector.broadcast %cst_196 : f32 to vector<2x32xf32>
    %485 = arith.divf %484, %483 : vector<2x32xf32>
    %486 = vector.extract_strided_slice %460 {offsets = [0, 64], sizes = [2, 32], strides = [1, 1]} : vector<2x96xf32> to vector<2x32xf32>
    %487 = vector.extract_strided_slice %465 {offsets = [0, 64], sizes = [2, 32], strides = [1, 1]} : vector<2x96xf32> to vector<2x32xf32>
    %488 = arith.mulf %475, %487 : vector<2x32xf32>
    %489 = arith.addf %486, %488 : vector<2x32xf32>
    %490 = math.tanh %489 : vector<2x32xf32>
    %cst_197 = arith.constant 1.000000e+00 : f32
    %491 = vector.broadcast %cst_197 : f32 to vector<2x32xf32>
    %492 = arith.subf %491, %485 : vector<2x32xf32>
    %493 = arith.mulf %492, %490 : vector<2x32xf32>
    %494 = arith.mulf %485, %414 : vector<2x32xf32>
    %495 = arith.addf %493, %494 : vector<2x32xf32>
    %496 = arith.index_cast %419 : i32 to index
    %c0_198 = arith.constant 0 : index
    %497 = vector.load %arg14[%496, %c0_198] : memref<16x32xf32, #tpu.memory_space<vmem>>, vector<2x32xf32>
    tpu.vector_store %arg14[%496, %c0_198], %458 {strides = array<i32>} : memref<16x32xf32, #tpu.memory_space<vmem>>, vector<2x32xf32>,
    %498 = arith.index_cast %421 : i32 to index
    %c0_199 = arith.constant 0 : index
    %499 = vector.load %arg15[%498, %c0_199] : memref<16x32xf32, #tpu.memory_space<vmem>>, vector<2x32xf32>
    tpu.vector_store %arg15[%498, %c0_199], %495 {strides = array<i32>} : memref<16x32xf32, #tpu.memory_space<vmem>>, vector<2x32xf32>,
    %c6_i32 = arith.constant 6 : i32
    %c2_i32_200 = arith.constant 2 : i32
    %500 = arith.muli %c6_i32, %c2_i32_200 : i32
    %c7_i32_201 = arith.constant 7 : i32
    %501 = arith.subi %c7_i32_201, %c6_i32 : i32
    %c2_i32_202 = arith.constant 2 : i32
    %502 = arith.muli %501, %c2_i32_202 : i32
    %503 = arith.index_cast %500 : i32 to index
    %c0_203 = arith.constant 0 : index
    %504 = vector.load %arg12[%503, %c0_203] : memref<16x96xf32, #tpu.memory_space<vmem>>, vector<2x96xf32>
    %c0_204 = arith.constant 0 : index
    %c0_205 = arith.constant 0 : index
    %505 = vector.load %arg2[%c0_204, %c0_205] : memref<32x96xf32, #tpu.memory_space<vmem>>, vector<32x96xf32>
    %cst_206 = arith.constant dense<0.000000e+00> : vector<2x96xf32>
    %506 = tpu.matmul %458, %505, %cst_206 {dimension_numbers = #tpu.dot_dimension_numbers<[1], [0], [0], [1], [0, 0, 1, 1], [], []>} : vector<2x32xf32>, vector<32x96xf32>, vector<2x96xf32> -> vector<2x96xf32>
    %c0_207 = arith.constant 0 : index
    %c0_208 = arith.constant 0 : index
    %507 = vector.load %arg4[%c0_207, %c0_208] : memref<1x96xf32, #tpu.memory_space<vmem>>, vector<1x96xf32>
    %508 = vector.broadcast %507 : vector<1x96xf32> to vector<2x96xf32>
    %509 = arith.addf %506, %508 : vector<2x96xf32>
    %510 = vector.extract_strided_slice %504 {offsets = [0, 0], sizes = [2, 32], strides = [1, 1]} : vector<2x96xf32> to vector<2x32xf32>
    %511 = vector.extract_strided_slice %509 {offsets = [0, 0], sizes = [2, 32], strides = [1, 1]} : vector<2x96xf32> to vector<2x32xf32>
    %512 = arith.addf %510, %511 : vector<2x32xf32>
    %cst_209 = arith.constant 0.000000e+00 : f32
    %513 = vector.broadcast %cst_209 : f32 to vector<2x32xf32>
    %514 = arith.subf %513, %512 : vector<2x32xf32>
    %515 = math.exp %514 : vector<2x32xf32>
    %cst_210 = arith.constant 1.000000e+00 : f32
    %516 = vector.broadcast %cst_210 : f32 to vector<2x32xf32>
    %517 = arith.addf %516, %515 : vector<2x32xf32>
    %cst_211 = arith.constant 1.000000e+00 : f32
    %518 = vector.broadcast %cst_211 : f32 to vector<2x32xf32>
    %519 = arith.divf %518, %517 : vector<2x32xf32>
    %520 = vector.extract_strided_slice %504 {offsets = [0, 32], sizes = [2, 32], strides = [1, 1]} : vector<2x96xf32> to vector<2x32xf32>
    %521 = vector.extract_strided_slice %509 {offsets = [0, 32], sizes = [2, 32], strides = [1, 1]} : vector<2x96xf32> to vector<2x32xf32>
    %522 = arith.addf %520, %521 : vector<2x32xf32>
    %cst_212 = arith.constant 0.000000e+00 : f32
    %523 = vector.broadcast %cst_212 : f32 to vector<2x32xf32>
    %524 = arith.subf %523, %522 : vector<2x32xf32>
    %525 = math.exp %524 : vector<2x32xf32>
    %cst_213 = arith.constant 1.000000e+00 : f32
    %526 = vector.broadcast %cst_213 : f32 to vector<2x32xf32>
    %527 = arith.addf %526, %525 : vector<2x32xf32>
    %cst_214 = arith.constant 1.000000e+00 : f32
    %528 = vector.broadcast %cst_214 : f32 to vector<2x32xf32>
    %529 = arith.divf %528, %527 : vector<2x32xf32>
    %530 = vector.extract_strided_slice %504 {offsets = [0, 64], sizes = [2, 32], strides = [1, 1]} : vector<2x96xf32> to vector<2x32xf32>
    %531 = vector.extract_strided_slice %509 {offsets = [0, 64], sizes = [2, 32], strides = [1, 1]} : vector<2x96xf32> to vector<2x32xf32>
    %532 = arith.mulf %519, %531 : vector<2x32xf32>
    %533 = arith.addf %530, %532 : vector<2x32xf32>
    %534 = math.tanh %533 : vector<2x32xf32>
    %cst_215 = arith.constant 1.000000e+00 : f32
    %535 = vector.broadcast %cst_215 : f32 to vector<2x32xf32>
    %536 = arith.subf %535, %529 : vector<2x32xf32>
    %537 = arith.mulf %536, %534 : vector<2x32xf32>
    %538 = arith.mulf %529, %458 : vector<2x32xf32>
    %539 = arith.addf %537, %538 : vector<2x32xf32>
    %540 = arith.index_cast %502 : i32 to index
    %c0_216 = arith.constant 0 : index
    %541 = vector.load %arg13[%540, %c0_216] : memref<16x96xf32, #tpu.memory_space<vmem>>, vector<2x96xf32>
    %c0_217 = arith.constant 0 : index
    %c0_218 = arith.constant 0 : index
    %542 = vector.load %arg6[%c0_217, %c0_218] : memref<32x96xf32, #tpu.memory_space<vmem>>, vector<32x96xf32>
    %cst_219 = arith.constant dense<0.000000e+00> : vector<2x96xf32>
    %543 = tpu.matmul %495, %542, %cst_219 {dimension_numbers = #tpu.dot_dimension_numbers<[1], [0], [0], [1], [0, 0, 1, 1], [], []>} : vector<2x32xf32>, vector<32x96xf32>, vector<2x96xf32> -> vector<2x96xf32>
    %c0_220 = arith.constant 0 : index
    %c0_221 = arith.constant 0 : index
    %544 = vector.load %arg8[%c0_220, %c0_221] : memref<1x96xf32, #tpu.memory_space<vmem>>, vector<1x96xf32>
    %545 = vector.broadcast %544 : vector<1x96xf32> to vector<2x96xf32>
    %546 = arith.addf %543, %545 : vector<2x96xf32>
    %547 = vector.extract_strided_slice %541 {offsets = [0, 0], sizes = [2, 32], strides = [1, 1]} : vector<2x96xf32> to vector<2x32xf32>
    %548 = vector.extract_strided_slice %546 {offsets = [0, 0], sizes = [2, 32], strides = [1, 1]} : vector<2x96xf32> to vector<2x32xf32>
    %549 = arith.addf %547, %548 : vector<2x32xf32>
    %cst_222 = arith.constant 0.000000e+00 : f32
    %550 = vector.broadcast %cst_222 : f32 to vector<2x32xf32>
    %551 = arith.subf %550, %549 : vector<2x32xf32>
    %552 = math.exp %551 : vector<2x32xf32>
    %cst_223 = arith.constant 1.000000e+00 : f32
    %553 = vector.broadcast %cst_223 : f32 to vector<2x32xf32>
    %554 = arith.addf %553, %552 : vector<2x32xf32>
    %cst_224 = arith.constant 1.000000e+00 : f32
    %555 = vector.broadcast %cst_224 : f32 to vector<2x32xf32>
    %556 = arith.divf %555, %554 : vector<2x32xf32>
    %557 = vector.extract_strided_slice %541 {offsets = [0, 32], sizes = [2, 32], strides = [1, 1]} : vector<2x96xf32> to vector<2x32xf32>
    %558 = vector.extract_strided_slice %546 {offsets = [0, 32], sizes = [2, 32], strides = [1, 1]} : vector<2x96xf32> to vector<2x32xf32>
    %559 = arith.addf %557, %558 : vector<2x32xf32>
    %cst_225 = arith.constant 0.000000e+00 : f32
    %560 = vector.broadcast %cst_225 : f32 to vector<2x32xf32>
    %561 = arith.subf %560, %559 : vector<2x32xf32>
    %562 = math.exp %561 : vector<2x32xf32>
    %cst_226 = arith.constant 1.000000e+00 : f32
    %563 = vector.broadcast %cst_226 : f32 to vector<2x32xf32>
    %564 = arith.addf %563, %562 : vector<2x32xf32>
    %cst_227 = arith.constant 1.000000e+00 : f32
    %565 = vector.broadcast %cst_227 : f32 to vector<2x32xf32>
    %566 = arith.divf %565, %564 : vector<2x32xf32>
    %567 = vector.extract_strided_slice %541 {offsets = [0, 64], sizes = [2, 32], strides = [1, 1]} : vector<2x96xf32> to vector<2x32xf32>
    %568 = vector.extract_strided_slice %546 {offsets = [0, 64], sizes = [2, 32], strides = [1, 1]} : vector<2x96xf32> to vector<2x32xf32>
    %569 = arith.mulf %556, %568 : vector<2x32xf32>
    %570 = arith.addf %567, %569 : vector<2x32xf32>
    %571 = math.tanh %570 : vector<2x32xf32>
    %cst_228 = arith.constant 1.000000e+00 : f32
    %572 = vector.broadcast %cst_228 : f32 to vector<2x32xf32>
    %573 = arith.subf %572, %566 : vector<2x32xf32>
    %574 = arith.mulf %573, %571 : vector<2x32xf32>
    %575 = arith.mulf %566, %495 : vector<2x32xf32>
    %576 = arith.addf %574, %575 : vector<2x32xf32>
    %577 = arith.index_cast %500 : i32 to index
    %c0_229 = arith.constant 0 : index
    %578 = vector.load %arg14[%577, %c0_229] : memref<16x32xf32, #tpu.memory_space<vmem>>, vector<2x32xf32>
    tpu.vector_store %arg14[%577, %c0_229], %539 {strides = array<i32>} : memref<16x32xf32, #tpu.memory_space<vmem>>, vector<2x32xf32>,
    %579 = arith.index_cast %502 : i32 to index
    %c0_230 = arith.constant 0 : index
    %580 = vector.load %arg15[%579, %c0_230] : memref<16x32xf32, #tpu.memory_space<vmem>>, vector<2x32xf32>
    tpu.vector_store %arg15[%579, %c0_230], %576 {strides = array<i32>} : memref<16x32xf32, #tpu.memory_space<vmem>>, vector<2x32xf32>,
    %c7_i32_231 = arith.constant 7 : i32
    %c2_i32_232 = arith.constant 2 : i32
    %581 = arith.muli %c7_i32_231, %c2_i32_232 : i32
    %c7_i32_233 = arith.constant 7 : i32
    %582 = arith.subi %c7_i32_233, %c7_i32_231 : i32
    %c2_i32_234 = arith.constant 2 : i32
    %583 = arith.muli %582, %c2_i32_234 : i32
    %584 = arith.index_cast %581 : i32 to index
    %c0_235 = arith.constant 0 : index
    %585 = vector.load %arg12[%584, %c0_235] : memref<16x96xf32, #tpu.memory_space<vmem>>, vector<2x96xf32>
    %c0_236 = arith.constant 0 : index
    %c0_237 = arith.constant 0 : index
    %586 = vector.load %arg2[%c0_236, %c0_237] : memref<32x96xf32, #tpu.memory_space<vmem>>, vector<32x96xf32>
    %cst_238 = arith.constant dense<0.000000e+00> : vector<2x96xf32>
    %587 = tpu.matmul %539, %586, %cst_238 {dimension_numbers = #tpu.dot_dimension_numbers<[1], [0], [0], [1], [0, 0, 1, 1], [], []>} : vector<2x32xf32>, vector<32x96xf32>, vector<2x96xf32> -> vector<2x96xf32>
    %c0_239 = arith.constant 0 : index
    %c0_240 = arith.constant 0 : index
    %588 = vector.load %arg4[%c0_239, %c0_240] : memref<1x96xf32, #tpu.memory_space<vmem>>, vector<1x96xf32>
    %589 = vector.broadcast %588 : vector<1x96xf32> to vector<2x96xf32>
    %590 = arith.addf %587, %589 : vector<2x96xf32>
    %591 = vector.extract_strided_slice %585 {offsets = [0, 0], sizes = [2, 32], strides = [1, 1]} : vector<2x96xf32> to vector<2x32xf32>
    %592 = vector.extract_strided_slice %590 {offsets = [0, 0], sizes = [2, 32], strides = [1, 1]} : vector<2x96xf32> to vector<2x32xf32>
    %593 = arith.addf %591, %592 : vector<2x32xf32>
    %cst_241 = arith.constant 0.000000e+00 : f32
    %594 = vector.broadcast %cst_241 : f32 to vector<2x32xf32>
    %595 = arith.subf %594, %593 : vector<2x32xf32>
    %596 = math.exp %595 : vector<2x32xf32>
    %cst_242 = arith.constant 1.000000e+00 : f32
    %597 = vector.broadcast %cst_242 : f32 to vector<2x32xf32>
    %598 = arith.addf %597, %596 : vector<2x32xf32>
    %cst_243 = arith.constant 1.000000e+00 : f32
    %599 = vector.broadcast %cst_243 : f32 to vector<2x32xf32>
    %600 = arith.divf %599, %598 : vector<2x32xf32>
    %601 = vector.extract_strided_slice %585 {offsets = [0, 32], sizes = [2, 32], strides = [1, 1]} : vector<2x96xf32> to vector<2x32xf32>
    %602 = vector.extract_strided_slice %590 {offsets = [0, 32], sizes = [2, 32], strides = [1, 1]} : vector<2x96xf32> to vector<2x32xf32>
    %603 = arith.addf %601, %602 : vector<2x32xf32>
    %cst_244 = arith.constant 0.000000e+00 : f32
    %604 = vector.broadcast %cst_244 : f32 to vector<2x32xf32>
    %605 = arith.subf %604, %603 : vector<2x32xf32>
    %606 = math.exp %605 : vector<2x32xf32>
    %cst_245 = arith.constant 1.000000e+00 : f32
    %607 = vector.broadcast %cst_245 : f32 to vector<2x32xf32>
    %608 = arith.addf %607, %606 : vector<2x32xf32>
    %cst_246 = arith.constant 1.000000e+00 : f32
    %609 = vector.broadcast %cst_246 : f32 to vector<2x32xf32>
    %610 = arith.divf %609, %608 : vector<2x32xf32>
    %611 = vector.extract_strided_slice %585 {offsets = [0, 64], sizes = [2, 32], strides = [1, 1]} : vector<2x96xf32> to vector<2x32xf32>
    %612 = vector.extract_strided_slice %590 {offsets = [0, 64], sizes = [2, 32], strides = [1, 1]} : vector<2x96xf32> to vector<2x32xf32>
    %613 = arith.mulf %600, %612 : vector<2x32xf32>
    %614 = arith.addf %611, %613 : vector<2x32xf32>
    %615 = math.tanh %614 : vector<2x32xf32>
    %cst_247 = arith.constant 1.000000e+00 : f32
    %616 = vector.broadcast %cst_247 : f32 to vector<2x32xf32>
    %617 = arith.subf %616, %610 : vector<2x32xf32>
    %618 = arith.mulf %617, %615 : vector<2x32xf32>
    %619 = arith.mulf %610, %539 : vector<2x32xf32>
    %620 = arith.addf %618, %619 : vector<2x32xf32>
    %621 = arith.index_cast %583 : i32 to index
    %c0_248 = arith.constant 0 : index
    %622 = vector.load %arg13[%621, %c0_248] : memref<16x96xf32, #tpu.memory_space<vmem>>, vector<2x96xf32>
    %c0_249 = arith.constant 0 : index
    %c0_250 = arith.constant 0 : index
    %623 = vector.load %arg6[%c0_249, %c0_250] : memref<32x96xf32, #tpu.memory_space<vmem>>, vector<32x96xf32>
    %cst_251 = arith.constant dense<0.000000e+00> : vector<2x96xf32>
    %624 = tpu.matmul %576, %623, %cst_251 {dimension_numbers = #tpu.dot_dimension_numbers<[1], [0], [0], [1], [0, 0, 1, 1], [], []>} : vector<2x32xf32>, vector<32x96xf32>, vector<2x96xf32> -> vector<2x96xf32>
    %c0_252 = arith.constant 0 : index
    %c0_253 = arith.constant 0 : index
    %625 = vector.load %arg8[%c0_252, %c0_253] : memref<1x96xf32, #tpu.memory_space<vmem>>, vector<1x96xf32>
    %626 = vector.broadcast %625 : vector<1x96xf32> to vector<2x96xf32>
    %627 = arith.addf %624, %626 : vector<2x96xf32>
    %628 = vector.extract_strided_slice %622 {offsets = [0, 0], sizes = [2, 32], strides = [1, 1]} : vector<2x96xf32> to vector<2x32xf32>
    %629 = vector.extract_strided_slice %627 {offsets = [0, 0], sizes = [2, 32], strides = [1, 1]} : vector<2x96xf32> to vector<2x32xf32>
    %630 = arith.addf %628, %629 : vector<2x32xf32>
    %cst_254 = arith.constant 0.000000e+00 : f32
    %631 = vector.broadcast %cst_254 : f32 to vector<2x32xf32>
    %632 = arith.subf %631, %630 : vector<2x32xf32>
    %633 = math.exp %632 : vector<2x32xf32>
    %cst_255 = arith.constant 1.000000e+00 : f32
    %634 = vector.broadcast %cst_255 : f32 to vector<2x32xf32>
    %635 = arith.addf %634, %633 : vector<2x32xf32>
    %cst_256 = arith.constant 1.000000e+00 : f32
    %636 = vector.broadcast %cst_256 : f32 to vector<2x32xf32>
    %637 = arith.divf %636, %635 : vector<2x32xf32>
    %638 = vector.extract_strided_slice %622 {offsets = [0, 32], sizes = [2, 32], strides = [1, 1]} : vector<2x96xf32> to vector<2x32xf32>
    %639 = vector.extract_strided_slice %627 {offsets = [0, 32], sizes = [2, 32], strides = [1, 1]} : vector<2x96xf32> to vector<2x32xf32>
    %640 = arith.addf %638, %639 : vector<2x32xf32>
    %cst_257 = arith.constant 0.000000e+00 : f32
    %641 = vector.broadcast %cst_257 : f32 to vector<2x32xf32>
    %642 = arith.subf %641, %640 : vector<2x32xf32>
    %643 = math.exp %642 : vector<2x32xf32>
    %cst_258 = arith.constant 1.000000e+00 : f32
    %644 = vector.broadcast %cst_258 : f32 to vector<2x32xf32>
    %645 = arith.addf %644, %643 : vector<2x32xf32>
    %cst_259 = arith.constant 1.000000e+00 : f32
    %646 = vector.broadcast %cst_259 : f32 to vector<2x32xf32>
    %647 = arith.divf %646, %645 : vector<2x32xf32>
    %648 = vector.extract_strided_slice %622 {offsets = [0, 64], sizes = [2, 32], strides = [1, 1]} : vector<2x96xf32> to vector<2x32xf32>
    %649 = vector.extract_strided_slice %627 {offsets = [0, 64], sizes = [2, 32], strides = [1, 1]} : vector<2x96xf32> to vector<2x32xf32>
    %650 = arith.mulf %637, %649 : vector<2x32xf32>
    %651 = arith.addf %648, %650 : vector<2x32xf32>
    %652 = math.tanh %651 : vector<2x32xf32>
    %cst_260 = arith.constant 1.000000e+00 : f32
    %653 = vector.broadcast %cst_260 : f32 to vector<2x32xf32>
    %654 = arith.subf %653, %647 : vector<2x32xf32>
    %655 = arith.mulf %654, %652 : vector<2x32xf32>
    %656 = arith.mulf %647, %576 : vector<2x32xf32>
    %657 = arith.addf %655, %656 : vector<2x32xf32>
    %658 = arith.index_cast %581 : i32 to index
    %c0_261 = arith.constant 0 : index
    %659 = vector.load %arg14[%658, %c0_261] : memref<16x32xf32, #tpu.memory_space<vmem>>, vector<2x32xf32>
    tpu.vector_store %arg14[%658, %c0_261], %620 {strides = array<i32>} : memref<16x32xf32, #tpu.memory_space<vmem>>, vector<2x32xf32>,
    %660 = arith.index_cast %583 : i32 to index
    %c0_262 = arith.constant 0 : index
    %661 = vector.load %arg15[%660, %c0_262] : memref<16x32xf32, #tpu.memory_space<vmem>>, vector<2x32xf32>
    tpu.vector_store %arg15[%660, %c0_262], %657 {strides = array<i32>} : memref<16x32xf32, #tpu.memory_space<vmem>>, vector<2x32xf32>,
    %c8_i32 = arith.constant 8 : i32
    %c0_263 = arith.constant 0 : index
    %c0_264 = arith.constant 0 : index
    %662 = vector.load %arg14[%c0_263, %c0_264] : memref<16x32xf32, #tpu.memory_space<vmem>>, vector<16x32xf32>
    %c0_265 = arith.constant 0 : index
    %c0_266 = arith.constant 0 : index
    %663 = vector.load %arg15[%c0_265, %c0_266] : memref<16x32xf32, #tpu.memory_space<vmem>>, vector<16x32xf32>
    %664 = tpu.concatenate %662, %663 in 1 : vector<16x32xf32>, vector<16x32xf32> -> vector<16x64xf32>
    %cst_267 = arith.constant 0.000000e+00 : f32
    %665 = vector.broadcast %cst_267 : f32 to vector<16x64xf32>
    %666 = arith.maximumf %664, %665 : vector<16x64xf32>
    %c0_268 = arith.constant 0 : index
    %c0_269 = arith.constant 0 : index
    %667 = vector.load %arg9[%c0_268, %c0_269] : memref<64x128xf32, #tpu.memory_space<vmem>>, vector<64x128xf32>
    %cst_270 = arith.constant dense<0.000000e+00> : vector<16x128xf32>
    %668 = tpu.matmul %666, %667, %cst_270 {dimension_numbers = #tpu.dot_dimension_numbers<[1], [0], [0], [1], [0, 0, 1, 1], [], []>} : vector<16x64xf32>, vector<64x128xf32>, vector<16x128xf32> -> vector<16x128xf32>
    %c0_271 = arith.constant 0 : index
    %c0_272 = arith.constant 0 : index
    %669 = vector.load %arg10[%c0_271, %c0_272] : memref<1x128xf32, #tpu.memory_space<vmem>>, vector<1x128xf32>
    %670 = vector.broadcast %669 : vector<1x128xf32> to vector<16x128xf32>
    %671 = arith.addf %668, %670 : vector<16x128xf32>
    %c0_273 = arith.constant 0 : index
    %c0_274 = arith.constant 0 : index
    %672 = vector.load %arg11[%c0_273, %c0_274] : memref<16x128xf32, #tpu.memory_space<vmem>>, vector<16x128xf32>
    tpu.vector_store %arg11[%c0_273, %c0_274], %671 {strides = array<i32>} : memref<16x128xf32, #tpu.memory_space<vmem>>, vector<16x128xf32>,
    return
  }
}

</mosaic_0001>

<bundles_post_ra>
// kernel: tpu_custom_call.1
= control target key start
LH: loop header
LB: loop body
LE: loop exit
PB: predicated region body
PF: predicated region fallthrough
CT: control target
= control target key end

     0   :  { %16 = vsyncpa [#allocation7], 0  ;;  %s3533_s0 = inlined_call_operand.hbm [shape: f32[16,32], index: 0, kind: input, shape index: {}]   ;;  %s3534_s1 = inlined_call_operand.hbm [shape: f32[32,96], index: 1, kind: input, shape index: {}]   ;;  %s3535_s2 = inlined_call_operand.hbm [shape: f32[32,96], index: 2, kind: input, shape index: {}]   ;;  %s3536_s3 = inlined_call_operand.vmem [shape: f32[1,96], index: 3, kind: input, shape index: {}]   ;;  %s3537_s4 = inlined_call_operand.vmem [shape: f32[1,96], index: 4, kind: input, shape index: {}]   ;;  %s3538_s5 = inlined_call_operand.hbm [shape: f32[32,96], index: 5, kind: input, shape index: {}]   ;;  %s3539_s6 = inlined_call_operand.hbm [shape: f32[32,96], index: 6, kind: input, shape index: {}]   ;;  %s3540_s7 = inlined_call_operand.vmem [shape: f32[1,96], index: 7, kind: input, shape index: {}]   ;;  %s3541_s8 = inlined_call_operand.vmem [shape: f32[1,96], index: 8, kind: input, shape index: {}]   ;;  %s3542_s9 = inlined_call_operand.hbm [shape: f32[64,128], index: 9, kind: input, shape index: {}]   ;;  %s3543_s10 = inlined_call_operand.vmem [shape: f32[1,128], index: 10, kind: input, shape index: {}]   ;;  %s3544_s11 = inlined_call_operand.hbm [shape: f32[16,128], index: 11, kind: output, shape index: {}]  }
   0x1   :  { %17 = vsyncpa [#allocation10], 0 }
   0x2   :  { %18 = vsyncpa [#allocation13], 0 }
   0x3   :  { %19 = vsyncpa [#allocation16], 0 }
   0x4   :  { %20 = vsyncpa [#allocation8], 0  ;;  %s3043_s17 = smov [#allocation9]   ;;  %s3044_s19 = smov [#allocation12]  }
   0x5   :  { %s38_s18 = sshll.u32 %s3043_s17, 4  ;;  %s66_s20 = sshll.u32 %s3044_s19, 4  ;;  %s39_s18 = int_to_ptr.vmem [resolvable:$true] %s38_s18  ;;  %s3118_s20 = int_to_ptr.vmem [resolvable:$true] %s66_s20 }
   0x6   :  { %s2879_s23 = scalar_lea.hbm %s3534_s1, 512 }
   0x7   :  { %p2880_p0 = scmp.ne.s32.totalorder %s3534_s1, %s2879_s23  ;;  %p2883_p1 = scmp.lt.u32.totalorder %s2879_s23, %s3534_s1 }
   0x9   :  { %p2885_p2 = pnand %p2883_p1, %p2880_p0 }
   0xb   :  { %2888 = shalt.err (!%p2885_p2)
}
   0xc   :  { %s2889_s28 = scalar_lea.vmem %s39_s18, 512  ;;  %p2894_p4 = scmp.lt.s32.totalorder %s39_s18, %s39_s18 }
   0xd   :  { %p2890_p3 = scmp.ne.s32.totalorder %s39_s18, %s2889_s28  ;;  %p2895_p5 = scmp.lt.s32.totalorder %s2889_s28, %s2889_s28 }
   0xf   :  { %p2896_p6 = por %p2895_p5, %p2894_p4 }
  0x11   :  { %p2897_p7 = pnand %p2896_p6, %p2890_p3 }
  0x13   :  { %2900 = shalt.err (!%p2897_p7)
}
  0x14   :  { %s3045_s29 = smov 128   ;;  %s3046_s30 = smov 8  }
  0x15   :  { %44 = dma.hbm_to_vmem [thread:$0]  %s3534_s1, 512, %s39_s18, [#allocation10], %s3045_s29, %s3045_s29, %s3046_s30  }
  0x16   :  { %s2901_s16 = scalar_lea.hbm %s3538_s5, 512 }
  0x17   :  { %p2902_p8 = scmp.ne.s32.totalorder %s3538_s5, %s2901_s16  ;;  %p2905_p9 = scmp.lt.u32.totalorder %s2901_s16, %s3538_s5 }
  0x19   :  { %p2907_p10 = pnand %p2905_p9, %p2902_p8 }
  0x1b   :  { %2910 = shalt.err (!%p2907_p10)
}
  0x1c   :  { %s2911_s23 = scalar_lea.vmem %s3118_s20, 512  ;;  %p2916_p12 = scmp.lt.s32.totalorder %s3118_s20, %s3118_s20 }
  0x1d   :  { %p2912_p11 = scmp.ne.s32.totalorder %s3118_s20, %s2911_s23  ;;  %p2917_p13 = scmp.lt.s32.totalorder %s2911_s23, %s2911_s23 }
  0x1f   :  { %p2918_p0 = por %p2917_p13, %p2916_p12 }
  0x21   :  { %p2919_p1 = pnand %p2918_p0, %p2912_p11 }
  0x23   :  { %2922 = shalt.err (!%p2919_p1)
}
  0x24   :  { %72 = dma.hbm_to_vmem [thread:$0]  %s3538_s5, 512, %s3118_s20, [#allocation13], %s3045_s29, %s3045_s29, %s3046_s30  }
  0x25   :  { %s3047_s24 = smov [#allocation6]   ;;  %s3048_s26 = smov [#allocation11]  }
  0x26   :  { %s26_s25 = sshll.u32 %s3047_s24, 4  ;;  %s50_s27 = sshll.u32 %s3048_s26, 4  ;;  %s27_s25 = int_to_ptr.vmem [resolvable:$true] %s26_s25  ;;  %s3155_s27 = int_to_ptr.vmem [resolvable:$true] %s50_s27 }
  0x27   :  { %s2923_s13 = scalar_lea.hbm %s3533_s0, 256 }
  0x28   :  { %p2924_p2 = scmp.ne.s32.totalorder %s3533_s0, %s2923_s13  ;;  %p2927_p3 = scmp.lt.u32.totalorder %s2923_s13, %s3533_s0 }
  0x2a   :  { %p2929_p4 = pnand %p2927_p3, %p2924_p2 }
  0x2c   :  { %2932 = shalt.err (!%p2929_p4)
}
  0x2d   :  { %s2933_s5 = scalar_lea.vmem %s27_s25, 256  ;;  %p2938_p6 = scmp.lt.s32.totalorder %s27_s25, %s27_s25 }
  0x2e   :  { %p2934_p5 = scmp.ne.s32.totalorder %s27_s25, %s2933_s5  ;;  %p2939_p7 = scmp.lt.s32.totalorder %s2933_s5, %s2933_s5 }
  0x30   :  { %p2940_p8 = por %p2939_p7, %p2938_p6 }
  0x32   :  { %p2941_p9 = pnand %p2940_p8, %p2934_p5 }
  0x34   :  { %2944 = shalt.err (!%p2941_p9)
}
  0x35   :  { %32 = dma.hbm_to_vmem [thread:$0]  %s3533_s0, 256, %s27_s25, [#allocation7], %s3045_s29, %s3045_s29, %s3046_s30  }
  0x36   :  { %s2945_s23 = scalar_lea.hbm %s3535_s2, 512 }
  0x37   :  { %p2946_p10 = scmp.ne.s32.totalorder %s3535_s2, %s2945_s23  ;;  %p2949_p11 = scmp.lt.u32.totalorder %s2945_s23, %s3535_s2 }
  0x39   :  { %p2951_p12 = pnand %p2949_p11, %p2946_p10 }
  0x3b   :  { %2954 = shalt.err (!%p2951_p12)
}
  0x3c   :  { %s2955_s28 = scalar_lea.vmem %s3155_s27, 512  ;;  %p2960_p0 = scmp.lt.s32.totalorder %s3155_s27, %s3155_s27 }
  0x3d   :  { %p2956_p13 = scmp.ne.s32.totalorder %s3155_s27, %s2955_s28  ;;  %p2961_p1 = scmp.lt.s32.totalorder %s2955_s28, %s2955_s28 }
  0x3f   :  { %p2962_p2 = por %p2961_p1, %p2960_p0 }
  0x41   :  { %p2963_p3 = pnand %p2962_p2, %p2956_p13 }
  0x43   :  { %2966 = shalt.err (!%p2963_p3)
}
  0x44   :  { %56 = dma.hbm_to_vmem [thread:$0]  %s3535_s2, 512, %s3155_s27, [#allocation10], %s3045_s29, %s3045_s29, %s3046_s30  }
  0x45   :  { %s3049_s12 = smov [#allocation14]   ;;  %s3050_s14 = smov [#allocation15]  }
  0x46   :  { %s78_s13 = sshll.u32 %s3049_s12, 4  ;;  %s94_s15 = sshll.u32 %s3050_s14, 4  ;;  %s79_s13 = int_to_ptr.vmem [resolvable:$true] %s78_s13  ;;  %s3192_s15 = int_to_ptr.vmem [resolvable:$true] %s94_s15 }
  0x47   :  { %s2967_s5 = scalar_lea.hbm %s3539_s6, 512 }
  0x48   :  { %p2968_p4 = scmp.ne.s32.totalorder %s3539_s6, %s2967_s5  ;;  %p2971_p5 = scmp.lt.u32.totalorder %s2967_s5, %s3539_s6 }
  0x4a   :  { %p2973_p6 = pnand %p2971_p5, %p2968_p4 }
  0x4c   :  { %2976 = shalt.err (!%p2973_p6)
}
  0x4d   :  { %s2977_s2 = scalar_lea.vmem %s79_s13, 512  ;;  %p2982_p8 = scmp.lt.s32.totalorder %s79_s13, %s79_s13 }
  0x4e   :  { %p2978_p7 = scmp.ne.s32.totalorder %s79_s13, %s2977_s2  ;;  %p2983_p9 = scmp.lt.s32.totalorder %s2977_s2, %s2977_s2 }
  0x50   :  { %p2984_p10 = por %p2983_p9, %p2982_p8 }
  0x52   :  { %p2985_p11 = pnand %p2984_p10, %p2978_p7 }
  0x54   :  { %2988 = shalt.err (!%p2985_p11)
}
  0x55   :  { %84 = dma.hbm_to_vmem [thread:$0]  %s3539_s6, 512, %s79_s13, [#allocation13], %s3045_s29, %s3045_s29, %s3046_s30  }
  0x56   :  { %s2989_s24 = scalar_lea.hbm %s3542_s9, 1024 }
  0x57   :  { %p2990_p12 = scmp.ne.s32.totalorder %s3542_s9, %s2989_s24  ;;  %p2993_p13 = scmp.lt.u32.totalorder %s2989_s24, %s3542_s9 }
  0x59   :  { %p2995_p0 = pnand %p2993_p13, %p2990_p12 }
  0x5b   :  { %2998 = shalt.err (!%p2995_p0)
}
  0x5c   :  { %s2999_s12 = scalar_lea.vmem %s3192_s15, 1024  ;;  %p3004_p2 = scmp.lt.s32.totalorder %s3192_s15, %s3192_s15 }
  0x5d   :  { %p3000_p1 = scmp.ne.s32.totalorder %s3192_s15, %s2999_s12  ;;  %p3005_p3 = scmp.lt.s32.totalorder %s2999_s12, %s2999_s12 }
  0x5f   :  { %p3006_p4 = por %p3005_p3, %p3004_p2 }
  0x61   :  { %p3007_p5 = pnand %p3006_p4, %p3000_p1 }
  0x63   :  { %3010 = shalt.err (!%p3007_p5)
}
  0x64   :  { %100 = dma.hbm_to_vmem [thread:$0]  %s3542_s9, 1024, %s3192_s15, [#allocation16], %s3045_s29, %s3045_s29, %s3046_s30  }
  0x65   :  { %3033 = dma.done.wait [#allocation7], 256  }
  0x66   :  { %3034 = vsyncadd [#allocation7], 4294967040 }
  0x67   :  { %3035 = dma.done.wait [#allocation10], 1024  }
  0x68   :  { %3036 = vsyncadd [#allocation10], 4294966272 }
  0x69   :  { %3037 = dma.done.wait [#allocation13], 1024  }
  0x6a   :  { %3038 = vsyncadd [#allocation13], 4294966272 }
  0x6b   :  { %3039 = dma.done.wait [#allocation16], 1024  }
  0x6c   :  { %3040 = vsyncadd [#allocation16], 4294966272  ;;  %v3051_v0 = vmov 0.0|0.0   ;;  %vm3052_vm0 = vmmov 0   ;;  %v3053_v1 = vmov 0.0   ;;  %vm134_vm1 = vcmask 261120  }
  0x6d   :  { %2656 = vmatprep.subr.bf16.mxu0 %v3051_v0  ;;  %2453 = vmatprep.mubr.msk.f32.mxu0 %vm3052_vm0, %v3053_v1  ;;  %v123_v2 = vld [vmem:[#allocation9] sm:$0xff]  ;;  %v124_v3 = vld [vmem:[#allocation9 + $0x8] sm:$0xff]  ;;  %v125_v4 = vld [vmem:[#allocation9 + $0x10] sm:$0xff]  ;;  %vm216_vm2 = vcmask 785408   ;;  %s3055_s19 = smov 96   ;;  %vm530_vm3 = vcmask 254976  }
  0x6e   :  { %v2640_v5 = vpack.c.bf16 %v124_v3, %v123_v2  ;;  %v126_v6 = vld [vmem:[#allocation9 + $0x18] sm:$0xff]  ;;  %v121_v7 = vld [vmem:[#allocation6] sm:$0xff]  ;;  %v219_v9 = vld [vmem:[#allocation12] sm:$0xff]  ;;  %vm2178_vm4 = vcmask 523264   ;;  %s3057_s1 = smov [#allocation17]  }
  0x6f   :  { %v2644_v8 = vpack.c.bf16 %v126_v6, %v125_v4  ;;  %2431 = vmatprep.mubr.msk.f32.mxu1 %vm134_vm1, %v121_v7  ;;  %v220_v10 = vld [vmem:[#allocation12 + $0x8] sm:$0xff]  ;;  %v308_v11 = vld [vmem:[#allocation11] sm:$0xff]  ;;  %v310_v14 = vld [vmem:[#allocation11 + $0x10] sm:$0xff]  ;;  %s2267_s18 = sshll.u32 %s3057_s1, 4  ;;  %s2268_s18 = int_to_ptr.vmem [resolvable:$true] %s2267_s18 }
  0x70   :  { %2641 = vmatprep.subr.bf16.mxu1 %v2640_v5  ;;  %v309_v12 = vld [vmem:[#allocation11 + $0x8] sm:$0xff]  ;;  %v311_v15 = vld [vmem:[#allocation11 + $0x18] sm:$0xff]  ;;  %v2648_v16 = vpack.c.bf16 %v220_v10, %v219_v9  ;;  %v221_v17 = vld [vmem:[#allocation12 + $0x10] sm:$0xff]  ;;  %s3011_s24 = scalar_lea.vmem %s2268_s18, 256  ;;  %p3016_p7 = scmp.lt.s32.totalorder %s2268_s18, %s2268_s18 }
  0x71   :  { %2643 = vmatpush3.bf16.msra.mxu1 %v2640_v5  ;;  %v3233_v13 = vpack.c.bf16 %v309_v12, %v308_v11  ;;  %v222_v18 = vld [vmem:[#allocation12 + $0x18] sm:$0xff]  ;;  %v3236_v19 = vpack.c.bf16 %v311_v15, %v310_v14  ;;  %v419_v22 = vld [vmem:[#allocation14] sm:$0xff]  ;;  %v420_v23 = vld [vmem:[#allocation14 + $0x8] sm:$0xff]  ;;  %p3012_p6 = scmp.ne.s32.totalorder %s2268_s18, %s3011_s24  ;;  %p3017_p8 = scmp.lt.s32.totalorder %s3011_s24, %s3011_s24 }
  0x72   :  { %2645 = vmatprep.subr.bf16.mxu1 %v2644_v8  ;;  %v122_v20 = vld [vmem:[#allocation6 + $0x8] sm:$0xff]  ;;  %v2652_v21 = vpack.c.bf16 %v222_v18, %v221_v17  ;;  %v3248_v24 = vpack.c.bf16 %v420_v23, %v419_v22  ;;  %v421_v25 = vld [vmem:[#allocation14 + $0x10] sm:$0xff] }
  0x73   :  { %2658 = vmatpush3.bf16.msra.mxu0 %v3233_v13  ;;  %v422_v26 = vld [vmem:[#allocation14 + $0x18] sm:$0xff]  ;;  %v2282_v28 = vld [vmem:[%s3536_s3] ss:$0 sm:$0xff]  ;;  %p3018_p9 = por %p3017_p8, %p3016_p7 }
  0x74   :  { %2659 = vmatprep.subr.bf16.mxu0 %v3051_v0  ;;  %v3255_v27 = vpack.c.bf16 %v422_v26, %v421_v25  ;;  %v2285_v35 = vld [vmem:[%s3540_s7] ss:$0 sm:$0xff]  ;;  %s3054_s7 = smov 64  }
  0x75   :  { %2647 = vmatpush3.bf16.msra.mxu1 %v2644_v8  ;;  %v3278_v40 = vld [vmem:[%s3541_s8] ss:$0 sm:$0xff]  ;;  %p3019_p10 = pnand %p3018_p9, %p3012_p6 }
  0x76   :  { %2649 = vmatprep.subr.bf16.mxu1 %v2648_v16  ;;  %v3284_v44 = vld [vmem:[%s3537_s4] ss:$0 sm:$0xff] }
  0x77   :  { %2661 = vmatpush3.bf16.msra.mxu0 %v3236_v19 }
  0x78   :  { %2432 = vmatmul.mubr.msk.f32.vlgmr.msra.gmra.mrb[0].mxu1 %vm134_vm1, %v122_v20  ;;  %2668 = vmatprep.subr.bf16.mxu0 %v3051_v0 }
  0x79   :  { %2651 = vmatpush3.bf16.msra.mxu1 %v2648_v16  ;;  %2442 = vmatprep.mubr.msk.f32.mxu1 %vm134_vm1, %v121_v7 }
  0x7a   :  { %2653 = vmatprep.subr.bf16.mxu1 %v2652_v21  ;;  %2454 = vmatmul.mubr.f32.vlgmr.msra.gmra.mrb[0].mxu0 %v3053_v1 }
  0x7b   :  { %2670 = vmatpush3.bf16.msra.mxu0 %v3233_v13  ;;  %2475 = vmatprep.mubr.msk.f32.mxu0 %vm3052_vm0, %v3053_v1 }
  0x7c   :  { %2671 = vmatprep.subr.bf16.mxu0 %v3051_v0 }
  0x7d   :  { %2655 = vmatpush3.bf16.msra.mxu1 %v2652_v21 }
  0x7e   :  { %2662 = vmatprep.subr.bf16.mxu1 %v3051_v0 }
  0x7f   :  { %2673 = vmatpush3.bf16.msra.mxu0 %v3236_v19 }
  0x80   :  { %2443 = vmatmul.mubr.msk.f32.vlgmr.msra.gmra.mrb[2].mxu1 %vm134_vm1, %v122_v20  ;;  %2680 = vmatprep.subr.bf16.mxu0 %v3051_v0 }
  0x81   :  { %2664 = vmatpush3.bf16.msra.mxu1 %v3248_v24  ;;  %2464 = vmatprep.mubr.msk.f32.mxu1 %vm3052_vm0, %v3053_v1 }
  0x82   :  { %2665 = vmatprep.subr.bf16.mxu1 %v3051_v0 }
  0x85   :  { %2667 = vmatpush3.bf16.msra.mxu1 %v3255_v27 }
  0x86   :  { %2674 = vmatprep.subr.bf16.mxu1 %v3051_v0 }
  0x88   :  { %2465 = vmatmul.mubr.f32.vlgmr.msra.gmra.mrb[4].mxu1 %v3053_v1 }
  0x89   :  { %2676 = vmatpush3.bf16.msra.mxu1 %v3248_v24  ;;  %2486 = vmatprep.mubr.msk.f32.mxu1 %vm3052_vm0, %v3053_v1 }
  0x8a   :  { %2677 = vmatprep.subr.bf16.mxu1 %v3051_v0 }
  0x8d   :  { %2679 = vmatpush3.bf16.msra.mxu1 %v3255_v27 }
  0x8e   :  { %2686 = vmatprep.subr.bf16.mxu1 %v3051_v0 }
 0x14b   :  { %v2433_v29 = vpop.f32.mrb[0].mxu1 }
 0x14c   :  { %v213_v30 = vadd.f32 %v2433_v29, %v2282_v28  ;;  %v207_v31 = vpop.f32.mrb[1].mxu1 }
 0x14d   :  { %v208_v32 = vadd.f32 %v2282_v28, %v207_v31  ;;  %v388_v33 = vpop.f32.mrb[0].mxu0 }
 0x14e   :  { %218 = vst.msk [vmem:[#allocation2 + $0x8] sm:$0xff] %vm216_vm2, %v213_v30  ;;  %v2455_v34 = vpop.f32.mrb[1].mxu0  ;;  %v389_v45 = vadd.f32 %v3284_v44, %v388_v33 }
 0x14f   :  { %217 = vst.msk [vmem:[#allocation2] sm:$0xff] %vm216_vm2, %v208_v32 }
 0x153   :  { %v2444_v36 = vpop.f32.mrb[2].mxu1 }
 0x154   :  { %v302_v37 = vadd.f32 %v2444_v36, %v2285_v35  ;;  %v296_v38 = vpop.f32.mrb[3].mxu1 }
 0x155   :  { %v297_v39 = vadd.f32 %v2285_v35, %v296_v38 }
 0x156   :  { %306 = vst.msk [vmem:[#allocation3 + $0x8] sm:$0xff] %vm216_vm2, %v302_v37  ;;  %v307_v48 = vld [vmem:[#allocation2] sm:$0x3]  ;;  %v537_v32 = vld [vmem:[#allocation2 + $0x2] sm:$0x3] }
 0x157   :  { %305 = vst.msk [vmem:[#allocation3] sm:$0xff] %vm216_vm2, %v297_v39  ;;  %v392_v49 = vadd.f32 %v389_v45, %v307_v48 }
 0x159   :  { %v393_v51 = vsub.f32 0.0, %v392_v49 }
 0x15b   :  { %v496_v41 = vpop.f32.mrb[4].mxu1  ;;  %v394_v53 = vmul.f32 1.442695, %v393_v51 }
 0x15c   :  { %v497_v42 = vadd.f32 %v3278_v40, %v496_v41  ;;  %v2466_v43 = vpop.f32.mrb[5].mxu1 }
 0x15d   :  { %v418_v46 = vld [vmem:[#allocation3 + $0xe] sm:$0x3]  ;;  %v647_v30 = vld [vmem:[#allocation3 + $0xc] sm:$0x3] }
 0x15e   :  { %508 = vrot.lane.b32.xlu0 %v497_v42, %s3054_s7  ;;  %v500_v47 = vadd.f32 %v497_v42, %v418_v46 }
 0x160   :  { %v501_v50 = vsub.f32 0.0, %v500_v47 }
 0x162   :  { %400 = vrot.lane.b32.xlu0 %v389_v45, %s3054_s7  ;;  %v502_v52 = vmul.f32 1.442695, %v501_v50 }
 0x164   :  { %2783 = vpow2.f32 %v502_v52 }
 0x165   :  { %2785 = vpow2.f32 %v394_v53 }
 0x16e   :  { %v2784_v54 = vpop.eup %2783 }
 0x16f   :  { %v504_v55 = vadd.f32 1.0, %v2784_v54  ;;  %v2786_v56 = vpop.eup %2785 }
 0x170   :  { %v396_v57 = vadd.f32 1.0, %v2786_v56 }
 0x171   :  { %2787 = vrcp.f32 %v504_v55 }
 0x172   :  { %2789 = vrcp.f32 %v396_v57 }
 0x17b   :  { %v2788_v58 = vpop.eup %2787 }
 0x17c   :  { %v2790_v61 = vpop.eup %2789  ;;  %v518_v8 = vsub.f32 1.0, %v2788_v58  ;;  %v524_v10 = vmul.f32 0.0, %v2788_v58 }
 0x17d   :  { %v410_v14 = vsub.f32 1.0, %v2790_v61  ;;  %v416_v16 = vmul.f32 0.0, %v2790_v61 }
 0x1d0   :  { %v509_v59 = vpop.permute.xlu0 %508 }
 0x1d1   :  { %v511_v60 = vmul.f32 %v2788_v58, %v509_v59 }
 0x1d3   :  { %513 = vrot.lane.b32.xlu1 %v511_v60, %s3054_s7 }
 0x1d4   :  { %v401_v62 = vpop.permute.xlu0 %400 }
 0x1d5   :  { %v403_v63 = vmul.f32 %v2790_v61, %v401_v62 }
 0x1d7   :  { %405 = vrot.lane.b32.xlu1 %v403_v63, %s3054_s7 }
 0x245   :  { %v514_v2 = vpop.permute.xlu1 %513 }
 0x246   :  { %v516_v3 = vadd.f32 %v514_v2, %v418_v46 }
 0x248   :  { %2791 = vtanh.f32 %v516_v3 }
 0x249   :  { %v406_v4 = vpop.permute.xlu1 %405 }
 0x24a   :  { %v408_v5 = vadd.f32 %v406_v4, %v307_v48 }
 0x24c   :  { %2793 = vtanh.f32 %v408_v5 }
 0x252   :  { %v2792_v6 = vpop.eup %2791 }
 0x253   :  { %520 = vrot.lane.b32.xlu0 %v2792_v6, %s3055_s19 }
 0x256   :  { %v2794_v7 = vpop.eup %2793 }
 0x257   :  { %412 = vrot.lane.b32.xlu1 %v2794_v7, %s3055_s19 }
 0x2c5   :  { %v521_v9 = vpop.permute.xlu0 %520 }
 0x2c6   :  { %v523_v11 = vmul.f32 %v521_v9, %v518_v8 }
 0x2c8   :  { %v3293_v12 = vadd.f32 %v524_v10, %v523_v11 }
 0x2c9   :  { %v413_v15 = vpop.permute.xlu1 %412 }
 0x2ca   :  { %v415_v17 = vmul.f32 %v413_v15, %v410_v14  ;;  %533 = vrot.lane.b32.xlu0 %v3293_v12, %s3055_s19  ;;  %v767_v15 = vld [vmem:[#allocation2 + $0x4] sm:$0x3] }
 0x2cc   :  { %v3297_v18 = vadd.f32 %v416_v16, %v415_v17 }
 0x2ce   :  { %527 = vrot.lane.b32.xlu1 %v3297_v18, %s3055_s19 }
 0x33c   :  { %v534_v20 = vpop.permute.xlu0 %533 }
 0x33d   :  { %536 = vst.msk [vmem:[#allocation5 + $0xe] sm:$0x3] %vm530_vm3, %v534_v20  ;;  %2487 = vmatmul.mubr.msk.f32.vlgmr.msra.gmra.mrb[6].mxu1 %vm134_vm1, %v534_v20 }
 0x33e   :  { %2688 = vmatpush3.bf16.msra.mxu1 %v3248_v24  ;;  %2508 = vmatprep.mubr.msk.f32.mxu1 %vm3052_vm0, %v3053_v1 }
 0x33f   :  { %2689 = vmatprep.subr.bf16.mxu1 %v3051_v0 }
 0x340   :  { %v528_v21 = vpop.permute.xlu1 %527 }
 0x341   :  { %531 = vst.msk [vmem:[#allocation4] sm:$0x3] %vm530_vm3, %v528_v21  ;;  %2476 = vmatmul.mubr.msk.f32.vlgmr.msra.gmra.mrb[2].mxu0 %vm134_vm1, %v528_v21 }
 0x342   :  { %2682 = vmatpush3.bf16.msra.mxu0 %v3233_v13  ;;  %2691 = vmatpush3.bf16.msra.mxu1 %v3255_v27 }
 0x343   :  { %2683 = vmatprep.subr.bf16.mxu0 %v3051_v0  ;;  %2497 = vmatprep.mubr.msk.f32.mxu0 %vm3052_vm0, %v3053_v1 }
 0x344   :  { %2698 = vmatprep.subr.bf16.mxu1 %v3051_v0 }
 0x346   :  { %2685 = vmatpush3.bf16.msra.mxu0 %v3236_v19 }
 0x347   :  { %2692 = vmatprep.subr.bf16.mxu0 %v3051_v0 }
 0x410   :  { %v727_v22 = vpop.f32.mrb[6].mxu1 }
 0x411   :  { %v728_v23 = vadd.f32 %v3278_v40, %v727_v22  ;;  %v2488_v25 = vpop.f32.mrb[7].mxu1 }
 0x413   :  { %739 = vrot.lane.b32.xlu0 %v728_v23, %s3054_s7  ;;  %v731_v31 = vadd.f32 %v728_v23, %v647_v30 }
 0x414   :  { %v617_v26 = vpop.f32.mrb[2].mxu0 }
 0x415   :  { %v618_v28 = vadd.f32 %v3284_v44, %v617_v26  ;;  %v2477_v29 = vpop.f32.mrb[3].mxu0  ;;  %v732_v33 = vsub.f32 0.0, %v731_v31 }
 0x417   :  { %629 = vrot.lane.b32.xlu1 %v618_v28, %s3054_s7  ;;  %v621_v34 = vadd.f32 %v618_v28, %v537_v32  ;;  %v733_v35 = vmul.f32 1.442695, %v732_v33 }
 0x419   :  { %v622_v36 = vsub.f32 0.0, %v621_v34  ;;  %2795 = vpow2.f32 %v733_v35 }
 0x41b   :  { %v623_v37 = vmul.f32 1.442695, %v622_v36 }
 0x41d   :  { %2797 = vpow2.f32 %v623_v37 }
 0x423   :  { %v2796_v38 = vpop.eup %2795 }
 0x424   :  { %v735_v39 = vadd.f32 1.0, %v2796_v38 }
 0x426   :  { %2799 = vrcp.f32 %v735_v39 }
 0x427   :  { %v2798_v41 = vpop.eup %2797 }
 0x428   :  { %v625_v42 = vadd.f32 1.0, %v2798_v41 }
 0x42a   :  { %2801 = vrcp.f32 %v625_v42 }
 0x430   :  { %v2800_v43 = vpop.eup %2799 }
 0x431   :  { %v749_v56 = vsub.f32 1.0, %v2800_v43  ;;  %v755_v58 = vmul.f32 %v2800_v43, %v3293_v12  ;;  %v877_v12 = vld [vmem:[#allocation3 + $0xa] sm:$0x3] }
 0x434   :  { %v2802_v47 = vpop.eup %2801 }
 0x435   :  { %v639_v61 = vsub.f32 1.0, %v2802_v47  ;;  %v645_v63 = vmul.f32 %v2802_v47, %v3297_v18 }
 0x485   :  { %v740_v45 = vpop.permute.xlu0 %739 }
 0x486   :  { %v742_v46 = vmul.f32 %v2800_v43, %v740_v45 }
 0x488   :  { %744 = vrot.lane.b32.xlu0 %v742_v46, %s3054_s7 }
 0x489   :  { %v630_v48 = vpop.permute.xlu1 %629 }
 0x48a   :  { %v632_v49 = vmul.f32 %v2802_v47, %v630_v48 }
 0x48c   :  { %634 = vrot.lane.b32.xlu1 %v632_v49, %s3054_s7 }
 0x4fa   :  { %v745_v50 = vpop.permute.xlu0 %744 }
 0x4fb   :  { %v747_v51 = vadd.f32 %v745_v50, %v647_v30 }
 0x4fd   :  { %2803 = vtanh.f32 %v747_v51 }
 0x4fe   :  { %v635_v52 = vpop.permute.xlu1 %634 }
 0x4ff   :  { %v637_v53 = vadd.f32 %v635_v52, %v537_v32 }
 0x501   :  { %2805 = vtanh.f32 %v637_v53 }
 0x507   :  { %v2804_v54 = vpop.eup %2803 }
 0x508   :  { %751 = vrot.lane.b32.xlu0 %v2804_v54, %s3055_s19 }
 0x50b   :  { %v2806_v55 = vpop.eup %2805 }
 0x50c   :  { %641 = vrot.lane.b32.xlu1 %v2806_v55, %s3055_s19 }
 0x57a   :  { %v752_v57 = vpop.permute.xlu0 %751 }
 0x57b   :  { %v754_v59 = vmul.f32 %v752_v57, %v749_v56 }
 0x57d   :  { %v3326_v60 = vadd.f32 %v755_v58, %v754_v59 }
 0x57e   :  { %v642_v62 = vpop.permute.xlu1 %641 }
 0x57f   :  { %v644_v2 = vmul.f32 %v642_v62, %v639_v61  ;;  %763 = vrot.lane.b32.xlu0 %v3326_v60, %s3055_s19  ;;  %v997_v62 = vld [vmem:[#allocation2 + $0x6] sm:$0x3] }
 0x581   :  { %v3331_v3 = vadd.f32 %v645_v63, %v644_v2 }
 0x583   :  { %758 = vrot.lane.b32.xlu1 %v3331_v3, %s3055_s19 }
 0x5f1   :  { %v764_v4 = vpop.permute.xlu0 %763 }
 0x5f2   :  { %766 = vst.msk [vmem:[#allocation5 + $0xc] sm:$0x3] %vm530_vm3, %v764_v4  ;;  %2509 = vmatmul.mubr.msk.f32.vlgmr.msra.gmra.mrb[8].mxu1 %vm134_vm1, %v764_v4 }
 0x5f3   :  { %2700 = vmatpush3.bf16.msra.mxu1 %v3248_v24  ;;  %2530 = vmatprep.mubr.msk.f32.mxu1 %vm3052_vm0, %v3053_v1 }
 0x5f4   :  { %2701 = vmatprep.subr.bf16.mxu1 %v3051_v0 }
 0x5f5   :  { %v759_v5 = vpop.permute.xlu1 %758 }
 0x5f6   :  { %761 = vst.msk [vmem:[#allocation4 + $0x2] sm:$0x3] %vm530_vm3, %v759_v5  ;;  %2498 = vmatmul.mubr.msk.f32.vlgmr.msra.gmra.mrb[4].mxu0 %vm134_vm1, %v759_v5 }
 0x5f7   :  { %2694 = vmatpush3.bf16.msra.mxu0 %v3233_v13  ;;  %2703 = vmatpush3.bf16.msra.mxu1 %v3255_v27 }
 0x5f8   :  { %2695 = vmatprep.subr.bf16.mxu0 %v3051_v0  ;;  %2519 = vmatprep.mubr.msk.f32.mxu0 %vm3052_vm0, %v3053_v1 }
 0x5f9   :  { %2710 = vmatprep.subr.bf16.mxu1 %v3051_v0 }
 0x5fb   :  { %2697 = vmatpush3.bf16.msra.mxu0 %v3236_v19 }
 0x5fc   :  { %2704 = vmatprep.subr.bf16.mxu0 %v3051_v0 }
 0x6c5   :  { %v957_v6 = vpop.f32.mrb[8].mxu1 }
 0x6c6   :  { %v958_v7 = vadd.f32 %v3278_v40, %v957_v6  ;;  %v2510_v8 = vpop.f32.mrb[9].mxu1 }
 0x6c8   :  { %969 = vrot.lane.b32.xlu0 %v958_v7, %s3054_s7  ;;  %v961_v14 = vadd.f32 %v958_v7, %v877_v12 }
 0x6c9   :  { %v847_v9 = vpop.f32.mrb[4].mxu0 }
 0x6ca   :  { %v848_v10 = vadd.f32 %v3284_v44, %v847_v9  ;;  %v2499_v11 = vpop.f32.mrb[5].mxu0  ;;  %v962_v16 = vsub.f32 0.0, %v961_v14 }
 0x6cc   :  { %859 = vrot.lane.b32.xlu1 %v848_v10, %s3054_s7  ;;  %v851_v17 = vadd.f32 %v848_v10, %v767_v15  ;;  %v963_v18 = vmul.f32 1.442695, %v962_v16 }
 0x6ce   :  { %v852_v20 = vsub.f32 0.0, %v851_v17  ;;  %2807 = vpow2.f32 %v963_v18 }
 0x6d0   :  { %v853_v21 = vmul.f32 1.442695, %v852_v20 }
 0x6d2   :  { %2809 = vpow2.f32 %v853_v21 }
 0x6d8   :  { %v2808_v22 = vpop.eup %2807 }
 0x6d9   :  { %v965_v23 = vadd.f32 1.0, %v2808_v22 }
 0x6db   :  { %2811 = vrcp.f32 %v965_v23 }
 0x6dc   :  { %v2810_v25 = vpop.eup %2809 }
 0x6dd   :  { %v855_v26 = vadd.f32 1.0, %v2810_v25 }
 0x6df   :  { %2813 = vrcp.f32 %v855_v26 }
 0x6e5   :  { %v2812_v28 = vpop.eup %2811 }
 0x6e6   :  { %v979_v41 = vsub.f32 1.0, %v2812_v28  ;;  %v985_v43 = vmul.f32 %v2812_v28, %v3326_v60  ;;  %v1107_v60 = vld [vmem:[#allocation3 + $0x8] sm:$0x3] }
 0x6e9   :  { %v2814_v31 = vpop.eup %2813 }
 0x6ea   :  { %v869_v47 = vsub.f32 1.0, %v2814_v31  ;;  %v875_v49 = vmul.f32 %v2814_v31, %v3331_v3 }
 0x73a   :  { %v970_v29 = vpop.permute.xlu0 %969 }
 0x73b   :  { %v972_v30 = vmul.f32 %v2812_v28, %v970_v29 }
 0x73d   :  { %974 = vrot.lane.b32.xlu0 %v972_v30, %s3054_s7 }
 0x73e   :  { %v860_v32 = vpop.permute.xlu1 %859 }
 0x73f   :  { %v862_v33 = vmul.f32 %v2814_v31, %v860_v32 }
 0x741   :  { %864 = vrot.lane.b32.xlu1 %v862_v33, %s3054_s7 }
 0x7af   :  { %v975_v34 = vpop.permute.xlu0 %974 }
 0x7b0   :  { %v977_v35 = vadd.f32 %v975_v34, %v877_v12 }
 0x7b2   :  { %2815 = vtanh.f32 %v977_v35 }
 0x7b3   :  { %v865_v36 = vpop.permute.xlu1 %864 }
 0x7b4   :  { %v867_v37 = vadd.f32 %v865_v36, %v767_v15 }
 0x7b6   :  { %2817 = vtanh.f32 %v867_v37 }
 0x7bc   :  { %v2816_v38 = vpop.eup %2815 }
 0x7bd   :  { %981 = vrot.lane.b32.xlu0 %v2816_v38, %s3055_s19 }
 0x7c0   :  { %v2818_v39 = vpop.eup %2817 }
 0x7c1   :  { %871 = vrot.lane.b32.xlu1 %v2818_v39, %s3055_s19 }
 0x82f   :  { %v982_v42 = vpop.permute.xlu0 %981 }
 0x830   :  { %v984_v45 = vmul.f32 %v982_v42, %v979_v41 }
 0x832   :  { %v3360_v46 = vadd.f32 %v985_v43, %v984_v45 }
 0x833   :  { %v872_v48 = vpop.permute.xlu1 %871 }
 0x834   :  { %v874_v50 = vmul.f32 %v872_v48, %v869_v47  ;;  %993 = vrot.lane.b32.xlu0 %v3360_v46, %s3055_s19  ;;  %v1227_v48 = vld [vmem:[#allocation2 + $0x8] sm:$0x3] }
 0x836   :  { %v3365_v51 = vadd.f32 %v875_v49, %v874_v50 }
 0x838   :  { %988 = vrot.lane.b32.xlu1 %v3365_v51, %s3055_s19 }
 0x8a6   :  { %v994_v52 = vpop.permute.xlu0 %993 }
 0x8a7   :  { %996 = vst.msk [vmem:[#allocation5 + $0xa] sm:$0x3] %vm530_vm3, %v994_v52  ;;  %2531 = vmatmul.mubr.msk.f32.vlgmr.msra.gmra.mrb[10].mxu1 %vm134_vm1, %v994_v52 }
 0x8a8   :  { %2712 = vmatpush3.bf16.msra.mxu1 %v3248_v24  ;;  %2552 = vmatprep.mubr.msk.f32.mxu1 %vm3052_vm0, %v3053_v1 }
 0x8a9   :  { %2713 = vmatprep.subr.bf16.mxu1 %v3051_v0 }
 0x8aa   :  { %v989_v53 = vpop.permute.xlu1 %988 }
 0x8ab   :  { %991 = vst.msk [vmem:[#allocation4 + $0x4] sm:$0x3] %vm530_vm3, %v989_v53  ;;  %2520 = vmatmul.mubr.msk.f32.vlgmr.msra.gmra.mrb[6].mxu0 %vm134_vm1, %v989_v53 }
 0x8ac   :  { %2706 = vmatpush3.bf16.msra.mxu0 %v3233_v13  ;;  %2715 = vmatpush3.bf16.msra.mxu1 %v3255_v27 }
 0x8ad   :  { %2707 = vmatprep.subr.bf16.mxu0 %v3051_v0  ;;  %2541 = vmatprep.mubr.msk.f32.mxu0 %vm3052_vm0, %v3053_v1 }
 0x8ae   :  { %2722 = vmatprep.subr.bf16.mxu1 %v3051_v0 }
 0x8b0   :  { %2709 = vmatpush3.bf16.msra.mxu0 %v3236_v19 }
 0x8b1   :  { %2716 = vmatprep.subr.bf16.mxu0 %v3051_v0 }
 0x97a   :  { %v1187_v54 = vpop.f32.mrb[10].mxu1 }
 0x97b   :  { %v1188_v55 = vadd.f32 %v3278_v40, %v1187_v54  ;;  %v2532_v56 = vpop.f32.mrb[11].mxu1 }
 0x97d   :  { %1199 = vrot.lane.b32.xlu0 %v1188_v55, %s3054_s7  ;;  %v1191_v61 = vadd.f32 %v1188_v55, %v1107_v60 }
 0x97e   :  { %v1077_v57 = vpop.f32.mrb[6].mxu0 }
 0x97f   :  { %v1078_v58 = vadd.f32 %v3284_v44, %v1077_v57  ;;  %v2521_v59 = vpop.f32.mrb[7].mxu0  ;;  %v1192_v63 = vsub.f32 0.0, %v1191_v61 }
 0x981   :  { %1089 = vrot.lane.b32.xlu1 %v1078_v58, %s3054_s7  ;;  %v1081_v2 = vadd.f32 %v1078_v58, %v997_v62  ;;  %v1193_v3 = vmul.f32 1.442695, %v1192_v63 }
 0x983   :  { %v1082_v4 = vsub.f32 0.0, %v1081_v2  ;;  %2819 = vpow2.f32 %v1193_v3 }
 0x985   :  { %v1083_v5 = vmul.f32 1.442695, %v1082_v4 }
 0x987   :  { %2821 = vpow2.f32 %v1083_v5 }
 0x98d   :  { %v2820_v6 = vpop.eup %2819 }
 0x98e   :  { %v1195_v7 = vadd.f32 1.0, %v2820_v6 }
 0x990   :  { %2823 = vrcp.f32 %v1195_v7 }
 0x991   :  { %v2822_v8 = vpop.eup %2821 }
 0x992   :  { %v1085_v9 = vadd.f32 1.0, %v2822_v8 }
 0x994   :  { %2825 = vrcp.f32 %v1085_v9 }
 0x99a   :  { %v2824_v10 = vpop.eup %2823 }
 0x99b   :  { %v1209_v25 = vsub.f32 1.0, %v2824_v10  ;;  %v1215_v28 = vmul.f32 %v2824_v10, %v3360_v46  ;;  %v1337_v46 = vld [vmem:[#allocation3 + $0x6] sm:$0x3] }
 0x99e   :  { %v2826_v14 = vpop.eup %2825 }
 0x99f   :  { %v1099_v31 = vsub.f32 1.0, %v2826_v14  ;;  %v1105_v33 = vmul.f32 %v2826_v14, %v3365_v51 }
 0x9ef   :  { %v1200_v11 = vpop.permute.xlu0 %1199 }
 0x9f0   :  { %v1202_v12 = vmul.f32 %v2824_v10, %v1200_v11 }
 0x9f2   :  { %1204 = vrot.lane.b32.xlu0 %v1202_v12, %s3054_s7 }
 0x9f3   :  { %v1090_v15 = vpop.permute.xlu1 %1089 }
 0x9f4   :  { %v1092_v16 = vmul.f32 %v2826_v14, %v1090_v15 }
 0x9f6   :  { %1094 = vrot.lane.b32.xlu1 %v1092_v16, %s3054_s7 }
 0xa64   :  { %v1205_v17 = vpop.permute.xlu0 %1204 }
 0xa65   :  { %v1207_v18 = vadd.f32 %v1205_v17, %v1107_v60 }
 0xa67   :  { %2827 = vtanh.f32 %v1207_v18 }
 0xa68   :  { %v1095_v20 = vpop.permute.xlu1 %1094 }
 0xa69   :  { %v1097_v21 = vadd.f32 %v1095_v20, %v997_v62 }
 0xa6b   :  { %2829 = vtanh.f32 %v1097_v21 }
 0xa71   :  { %v2828_v22 = vpop.eup %2827 }
 0xa72   :  { %1211 = vrot.lane.b32.xlu0 %v2828_v22, %s3055_s19 }
 0xa75   :  { %v2830_v23 = vpop.eup %2829 }
 0xa76   :  { %1101 = vrot.lane.b32.xlu1 %v2830_v23, %s3055_s19 }
 0xae4   :  { %v1212_v26 = vpop.permute.xlu0 %1211 }
 0xae5   :  { %v1214_v29 = vmul.f32 %v1212_v26, %v1209_v25  ;;  %v1567_v26 = vld [vmem:[#allocation3 + $0x4] sm:$0x3] }
 0xae7   :  { %v3394_v30 = vadd.f32 %v1215_v28, %v1214_v29  ;;  %v1457_v29 = vld [vmem:[#allocation2 + $0xa] sm:$0x3] }
 0xae8   :  { %v1102_v32 = vpop.permute.xlu1 %1101 }
 0xae9   :  { %v1104_v34 = vmul.f32 %v1102_v32, %v1099_v31  ;;  %1223 = vrot.lane.b32.xlu0 %v3394_v30, %s3055_s19 }
 0xaeb   :  { %v3399_v35 = vadd.f32 %v1105_v33, %v1104_v34 }
 0xaed   :  { %1218 = vrot.lane.b32.xlu1 %v3399_v35, %s3055_s19 }
 0xb5b   :  { %v1224_v36 = vpop.permute.xlu0 %1223 }
 0xb5c   :  { %1226 = vst.msk [vmem:[#allocation5 + $0x8] sm:$0x3] %vm530_vm3, %v1224_v36  ;;  %2553 = vmatmul.mubr.msk.f32.vlgmr.msra.gmra.mrb[12].mxu1 %vm134_vm1, %v1224_v36 }
 0xb5d   :  { %2724 = vmatpush3.bf16.msra.mxu1 %v3248_v24  ;;  %2574 = vmatprep.mubr.msk.f32.mxu1 %vm3052_vm0, %v3053_v1 }
 0xb5e   :  { %2725 = vmatprep.subr.bf16.mxu1 %v3051_v0 }
 0xb5f   :  { %v1219_v37 = vpop.permute.xlu1 %1218 }
 0xb60   :  { %1221 = vst.msk [vmem:[#allocation4 + $0x6] sm:$0x3] %vm530_vm3, %v1219_v37  ;;  %2542 = vmatmul.mubr.msk.f32.vlgmr.msra.gmra.mrb[8].mxu0 %vm134_vm1, %v1219_v37 }
 0xb61   :  { %2718 = vmatpush3.bf16.msra.mxu0 %v3233_v13  ;;  %2727 = vmatpush3.bf16.msra.mxu1 %v3255_v27 }
 0xb62   :  { %2719 = vmatprep.subr.bf16.mxu0 %v3051_v0  ;;  %2563 = vmatprep.mubr.msk.f32.mxu0 %vm3052_vm0, %v3053_v1 }
 0xb63   :  { %2734 = vmatprep.subr.bf16.mxu1 %v3051_v0 }
 0xb65   :  { %2721 = vmatpush3.bf16.msra.mxu0 %v3236_v19 }
 0xb66   :  { %2728 = vmatprep.subr.bf16.mxu0 %v3051_v0 }
 0xc2f   :  { %v1417_v38 = vpop.f32.mrb[12].mxu1 }
 0xc30   :  { %v1418_v39 = vadd.f32 %v3278_v40, %v1417_v38  ;;  %v2554_v41 = vpop.f32.mrb[13].mxu1 }
 0xc32   :  { %1429 = vrot.lane.b32.xlu0 %v1418_v39, %s3054_s7  ;;  %v1421_v47 = vadd.f32 %v1418_v39, %v1337_v46 }
 0xc33   :  { %v1307_v42 = vpop.f32.mrb[8].mxu0 }
 0xc34   :  { %v1308_v43 = vadd.f32 %v3284_v44, %v1307_v42  ;;  %v2543_v45 = vpop.f32.mrb[9].mxu0  ;;  %v1422_v49 = vsub.f32 0.0, %v1421_v47 }
 0xc36   :  { %1319 = vrot.lane.b32.xlu1 %v1308_v43, %s3054_s7  ;;  %v1311_v50 = vadd.f32 %v1308_v43, %v1227_v48  ;;  %v1423_v51 = vmul.f32 1.442695, %v1422_v49 }
 0xc38   :  { %v1312_v52 = vsub.f32 0.0, %v1311_v50  ;;  %2831 = vpow2.f32 %v1423_v51 }
 0xc3a   :  { %v1313_v53 = vmul.f32 1.442695, %v1312_v52 }
 0xc3c   :  { %2833 = vpow2.f32 %v1313_v53 }
 0xc42   :  { %v2832_v54 = vpop.eup %2831 }
 0xc43   :  { %v1425_v55 = vadd.f32 1.0, %v2832_v54 }
 0xc45   :  { %2835 = vrcp.f32 %v1425_v55 }
 0xc46   :  { %v2834_v56 = vpop.eup %2833 }
 0xc47   :  { %v1315_v57 = vadd.f32 1.0, %v2834_v56 }
 0xc49   :  { %2837 = vrcp.f32 %v1315_v57 }
 0xc4f   :  { %v2836_v58 = vpop.eup %2835 }
 0xc50   :  { %v1439_v8 = vsub.f32 1.0, %v2836_v58  ;;  %v1445_v10 = vmul.f32 %v2836_v58, %v3394_v30 }
 0xc53   :  { %v2838_v61 = vpop.eup %2837 }
 0xc54   :  { %v1329_v14 = vsub.f32 1.0, %v2838_v61  ;;  %v1335_v16 = vmul.f32 %v2838_v61, %v3399_v35 }
 0xca4   :  { %v1430_v59 = vpop.permute.xlu0 %1429 }
 0xca5   :  { %v1432_v60 = vmul.f32 %v2836_v58, %v1430_v59 }
 0xca7   :  { %1434 = vrot.lane.b32.xlu0 %v1432_v60, %s3054_s7 }
 0xca8   :  { %v1320_v62 = vpop.permute.xlu1 %1319 }
 0xca9   :  { %v1322_v63 = vmul.f32 %v2838_v61, %v1320_v62 }
 0xcab   :  { %1324 = vrot.lane.b32.xlu1 %v1322_v63, %s3054_s7 }
 0xd19   :  { %v1435_v2 = vpop.permute.xlu0 %1434 }
 0xd1a   :  { %v1437_v3 = vadd.f32 %v1435_v2, %v1337_v46 }
 0xd1c   :  { %2839 = vtanh.f32 %v1437_v3 }
 0xd1d   :  { %v1325_v4 = vpop.permute.xlu1 %1324 }
 0xd1e   :  { %v1327_v5 = vadd.f32 %v1325_v4, %v1227_v48 }
 0xd20   :  { %2841 = vtanh.f32 %v1327_v5 }
 0xd26   :  { %v2840_v6 = vpop.eup %2839 }
 0xd27   :  { %1441 = vrot.lane.b32.xlu0 %v2840_v6, %s3055_s19 }
 0xd2a   :  { %v2842_v7 = vpop.eup %2841 }
 0xd2b   :  { %1331 = vrot.lane.b32.xlu1 %v2842_v7, %s3055_s19 }
 0xd99   :  { %v1442_v9 = vpop.permute.xlu0 %1441 }
 0xd9a   :  { %v1444_v11 = vmul.f32 %v1442_v9, %v1439_v8  ;;  %v1797_v8 = vld [vmem:[#allocation3 + $0x2] sm:$0x3] }
 0xd9c   :  { %v3428_v12 = vadd.f32 %v1445_v10, %v1444_v11  ;;  %v1687_v10 = vld [vmem:[#allocation2 + $0xc] sm:$0x3] }
 0xd9d   :  { %v1332_v15 = vpop.permute.xlu1 %1331 }
 0xd9e   :  { %v1334_v17 = vmul.f32 %v1332_v15, %v1329_v14  ;;  %1453 = vrot.lane.b32.xlu0 %v3428_v12, %s3055_s19 }
 0xda0   :  { %v3433_v18 = vadd.f32 %v1335_v16, %v1334_v17 }
 0xda2   :  { %1448 = vrot.lane.b32.xlu1 %v3433_v18, %s3055_s19 }
 0xe10   :  { %v1454_v20 = vpop.permute.xlu0 %1453 }
 0xe11   :  { %1456 = vst.msk [vmem:[#allocation5 + $0x6] sm:$0x3] %vm530_vm3, %v1454_v20  ;;  %2575 = vmatmul.mubr.msk.f32.vlgmr.msra.gmra.mrb[14].mxu1 %vm134_vm1, %v1454_v20 }
 0xe12   :  { %2736 = vmatpush3.bf16.msra.mxu1 %v3248_v24  ;;  %2596 = vmatprep.mubr.msk.f32.mxu1 %vm3052_vm0, %v3053_v1 }
 0xe13   :  { %2737 = vmatprep.subr.bf16.mxu1 %v3051_v0 }
 0xe14   :  { %v1449_v21 = vpop.permute.xlu1 %1448 }
 0xe15   :  { %1451 = vst.msk [vmem:[#allocation4 + $0x8] sm:$0x3] %vm530_vm3, %v1449_v21  ;;  %2564 = vmatmul.mubr.msk.f32.vlgmr.msra.gmra.mrb[10].mxu0 %vm134_vm1, %v1449_v21 }
 0xe16   :  { %2730 = vmatpush3.bf16.msra.mxu0 %v3233_v13  ;;  %2739 = vmatpush3.bf16.msra.mxu1 %v3255_v27 }
 0xe17   :  { %2731 = vmatprep.subr.bf16.mxu0 %v3051_v0  ;;  %2585 = vmatprep.mubr.msk.f32.mxu0 %vm3052_vm0, %v3053_v1 }
 0xe18   :  { %2746 = vmatprep.subr.bf16.mxu1 %v3051_v0 }
 0xe1a   :  { %2733 = vmatpush3.bf16.msra.mxu0 %v3236_v19 }
 0xe1b   :  { %2740 = vmatprep.subr.bf16.mxu0 %v3051_v0 }
 0xee4   :  { %v1647_v24 = vpop.f32.mrb[14].mxu1 }
 0xee5   :  { %v1648_v22 = vadd.f32 %v3278_v40, %v1647_v24  ;;  %v2576_v23 = vpop.f32.mrb[15].mxu1 }
 0xee7   :  { %1659 = vrot.lane.b32.xlu0 %v1648_v22, %s3054_s7  ;;  %v1651_v28 = vadd.f32 %v1648_v22, %v1567_v26 }
 0xee8   :  { %v1537_v13 = vpop.f32.mrb[10].mxu0 }
 0xee9   :  { %v1538_v27 = vadd.f32 %v3284_v44, %v1537_v13  ;;  %v2565_v25 = vpop.f32.mrb[11].mxu0  ;;  %v1652_v30 = vsub.f32 0.0, %v1651_v28  ;;  %v2028_v28 = vld [vmem:[#allocation14] sm:$0xff] }
 0xeeb   :  { %1549 = vrot.lane.b32.xlu1 %v1538_v27, %s3054_s7  ;;  %v1541_v31 = vadd.f32 %v1538_v27, %v1457_v29  ;;  %v1653_v19 = vmul.f32 1.442695, %v1652_v30  ;;  %v1918_v30 = vld [vmem:[#allocation11] sm:$0xff] }
 0xeed   :  { %v1542_v32 = vsub.f32 0.0, %v1541_v31  ;;  %2843 = vpow2.f32 %v1653_v19  ;;  %v1919_v19 = vld [vmem:[#allocation11 + $0x8] sm:$0xff] }
 0xeef   :  { %v1543_v33 = vmul.f32 1.442695, %v1542_v32  ;;  %v2030_v32 = vld [vmem:[#allocation14 + $0x10] sm:$0xff] }
 0xef1   :  { %2845 = vpow2.f32 %v1543_v33  ;;  %v2031_v33 = vld [vmem:[#allocation14 + $0x18] sm:$0xff] }
 0xef7   :  { %v2844_v34 = vpop.eup %2843 }
 0xef8   :  { %v1655_v35 = vadd.f32 1.0, %v2844_v34  ;;  %v2741_v34 = vpack.c.bf16 %v1919_v19, %v1918_v30  ;;  %v2164_v19 = vld [vmem:[#allocation15 + $0x8] sm:$0xff] }
 0xefa   :  { %2847 = vrcp.f32 %v1655_v35  ;;  %v2750_v35 = vpack.c.bf16 %v2031_v33, %v2030_v32  ;;  %v2165_v32 = vld [vmem:[#allocation15 + $0x10] sm:$0xff] }
 0xefb   :  { %v2846_v36 = vpop.eup %2845 }
 0xefc   :  { %v1545_v37 = vadd.f32 1.0, %v2846_v36 }
 0xefe   :  { %2849 = vrcp.f32 %v1545_v37 }
 0xf04   :  { %v2848_v38 = vpop.eup %2847 }
 0xf05   :  { %v1669_v52 = vsub.f32 1.0, %v2848_v38  ;;  %v1675_v54 = vmul.f32 %v2848_v38, %v3428_v12 }
 0xf08   :  { %v2850_v42 = vpop.eup %2849 }
 0xf09   :  { %v1559_v57 = vsub.f32 1.0, %v2850_v42  ;;  %v1565_v59 = vmul.f32 %v2850_v42, %v3433_v18 }
 0xf59   :  { %v1660_v39 = vpop.permute.xlu0 %1659 }
 0xf5a   :  { %v1662_v41 = vmul.f32 %v2848_v38, %v1660_v39  ;;  %v1920_v38 = vld [vmem:[#allocation11 + $0x10] sm:$0xff]  ;;  %v1921_v39 = vld [vmem:[#allocation11 + $0x18] sm:$0xff] }
 0xf5c   :  { %1664 = vrot.lane.b32.xlu0 %v1662_v41, %s3054_s7  ;;  %v2744_v41 = vpack.c.bf16 %v1921_v39, %v1920_v38  ;;  %v2168_v38 = vld [vmem:[#allocation15 + $0x28] sm:$0xff] }
 0xf5d   :  { %v1550_v43 = vpop.permute.xlu1 %1549 }
 0xf5e   :  { %v1552_v45 = vmul.f32 %v2850_v42, %v1550_v43 }
 0xf60   :  { %1554 = vrot.lane.b32.xlu1 %v1552_v45, %s3054_s7 }
 0xfce   :  { %v1665_v46 = vpop.permute.xlu0 %1664 }
 0xfcf   :  { %v1667_v47 = vadd.f32 %v1665_v46, %v1567_v26 }
 0xfd1   :  { %2851 = vtanh.f32 %v1667_v47 }
 0xfd2   :  { %v1555_v48 = vpop.permute.xlu1 %1554 }
 0xfd3   :  { %v1557_v49 = vadd.f32 %v1555_v48, %v1457_v29  ;;  %v2029_v29 = vld [vmem:[#allocation14 + $0x8] sm:$0xff] }
 0xfd4   :  { %v2747_v31 = vpack.c.bf16 %v2029_v29, %v2028_v28 }
 0xfd5   :  { %2853 = vtanh.f32 %v1557_v49 }
 0xfdb   :  { %v2852_v50 = vpop.eup %2851 }
 0xfdc   :  { %1671 = vrot.lane.b32.xlu0 %v2852_v50, %s3055_s19 }
 0xfdf   :  { %v2854_v51 = vpop.eup %2853 }
 0xfe0   :  { %1561 = vrot.lane.b32.xlu1 %v2854_v51, %s3055_s19 }
0x104e   :  { %v1672_v53 = vpop.permute.xlu0 %1671 }
0x104f   :  { %v1674_v55 = vmul.f32 %v1672_v53, %v1669_v52 }
0x1051   :  { %v3462_v56 = vadd.f32 %v1675_v54, %v1674_v55  ;;  %v2316_v54 = vld [vmem:[%s3541_s8] ss:$0 sm:$0xff] }
0x1052   :  { %v1562_v58 = vpop.permute.xlu1 %1561 }
0x1053   :  { %v1564_v60 = vmul.f32 %v1562_v58, %v1559_v57  ;;  %1683 = vrot.lane.b32.xlu0 %v3462_v56, %s3055_s19  ;;  %v2314_v58 = vld [vmem:[%s3537_s4] ss:$0 sm:$0xff]  ;;  %s3056_s4 = smov 32  }
0x1055   :  { %v3467_v61 = vadd.f32 %v1565_v59, %v1564_v60 }
0x1057   :  { %1678 = vrot.lane.b32.xlu1 %v3467_v61, %s3055_s19 }
0x10c5   :  { %v1684_v62 = vpop.permute.xlu0 %1683 }
0x10c6   :  { %1686 = vst.msk [vmem:[#allocation5 + $0x4] sm:$0x3] %vm530_vm3, %v1684_v62  ;;  %2597 = vmatmul.mubr.msk.f32.vlgmr.msra.gmra.mrb[16].mxu1 %vm134_vm1, %v1684_v62  ;;  %v2027_v62 = vld [vmem:[#allocation3] sm:$0x3] }
0x10c7   :  { %2618 = vmatprep.mubr.msk.f32.mxu1 %vm3052_vm0, %v3053_v1  ;;  %2748 = vmatpush3.bf16.msra.mxu1 %v2747_v31  ;;  %v2163_v31 = vld [vmem:[#allocation15] sm:$0xff] }
0x10c8   :  { %2749 = vmatprep.subr.bf16.mxu1 %v3051_v0  ;;  %v2752_v33 = vpack.c.bf16 %v2164_v19, %v2163_v31 }
0x10c9   :  { %v1679_v63 = vpop.permute.xlu1 %1678 }
0x10ca   :  { %1681 = vst.msk [vmem:[#allocation4 + $0xa] sm:$0x3] %vm530_vm3, %v1679_v63  ;;  %2586 = vmatmul.mubr.msk.f32.vlgmr.msra.gmra.mrb[12].mxu0 %vm134_vm1, %v1679_v63 }
0x10cb   :  { %2607 = vmatprep.mubr.msk.f32.mxu0 %vm3052_vm0, %v3053_v1  ;;  %2742 = vmatpush3.bf16.msra.mxu0 %v2741_v34  ;;  %v2166_v34 = vld [vmem:[#allocation15 + $0x18] sm:$0xff] }
0x10cc   :  { %2743 = vmatprep.subr.bf16.mxu0 %v3051_v0  ;;  %2751 = vmatpush3.bf16.msra.mxu1 %v2750_v35 }
0x10cf   :  { %2745 = vmatpush3.bf16.msra.mxu0 %v2744_v41  ;;  %v2150_v41 = vld [vmem:[#allocation5 + $0x8] sm:$0xff] }
0x10d0   :  { %2753 = vmatprep.subr.bf16.mxu0 %v2752_v33 }
0x1199   :  { %v1877_v2 = vpop.f32.mrb[16].mxu1 }
0x119a   :  { %v1878_v3 = vadd.f32 %v3278_v40, %v1877_v2  ;;  %v2598_v4 = vpop.f32.mrb[17].mxu1  ;;  %v1917_v2 = vld [vmem:[#allocation2 + $0xe] sm:$0x3] }
0x119c   :  { %1889 = vrot.lane.b32.xlu0 %v1878_v3, %s3054_s7  ;;  %v1881_v9 = vadd.f32 %v1878_v3, %v1797_v8 }
0x119d   :  { %v1767_v5 = vpop.f32.mrb[12].mxu0 }
0x119e   :  { %v1768_v6 = vadd.f32 %v3284_v44, %v1767_v5  ;;  %v2587_v7 = vpop.f32.mrb[13].mxu0  ;;  %v1882_v11 = vsub.f32 0.0, %v1881_v9 }
0x11a0   :  { %1779 = vrot.lane.b32.xlu1 %v1768_v6, %s3054_s7  ;;  %v1771_v12 = vadd.f32 %v1768_v6, %v1687_v10  ;;  %v1883_v14 = vmul.f32 1.442695, %v1882_v11 }
0x11a2   :  { %v1772_v15 = vsub.f32 0.0, %v1771_v12  ;;  %2855 = vpow2.f32 %v1883_v14 }
0x11a4   :  { %v1773_v1 = vmul.f32 1.442695, %v1772_v15 }
0x11a6   :  { %2857 = vpow2.f32 %v1773_v1 }
0x11ac   :  { %v2856_v40 = vpop.eup %2855 }
0x11ad   :  { %v1885_v16 = vadd.f32 1.0, %v2856_v40 }
0x11af   :  { %2859 = vrcp.f32 %v1885_v16 }
0x11b0   :  { %v2858_v17 = vpop.eup %2857 }
0x11b1   :  { %v1775_v18 = vadd.f32 1.0, %v2858_v17 }
0x11b3   :  { %2861 = vrcp.f32 %v1775_v18 }
0x11b9   :  { %v2860_v44 = vpop.eup %2859 }
0x11ba   :  { %v1899_v42 = vsub.f32 1.0, %v2860_v44  ;;  %v1905_v45 = vmul.f32 %v2860_v44, %v3462_v56 }
0x11bd   :  { %v2862_v24 = vpop.eup %2861 }
0x11be   :  { %v1789_v48 = vsub.f32 1.0, %v2862_v24  ;;  %v1795_v50 = vmul.f32 %v2862_v24, %v3467_v61 }
0x120e   :  { %v1890_v20 = vpop.permute.xlu0 %1889 }
0x120f   :  { %v1892_v21 = vmul.f32 %v2860_v44, %v1890_v20 }
0x1211   :  { %1894 = vrot.lane.b32.xlu0 %v1892_v21, %s3054_s7 }
0x1212   :  { %v1780_v22 = vpop.permute.xlu1 %1779 }
0x1213   :  { %v1782_v23 = vmul.f32 %v2862_v24, %v1780_v22 }
0x1215   :  { %1784 = vrot.lane.b32.xlu1 %v1782_v23, %s3054_s7 }
0x1283   :  { %v1895_v13 = vpop.permute.xlu0 %1894 }
0x1284   :  { %v1897_v27 = vadd.f32 %v1895_v13, %v1797_v8 }
0x1286   :  { %2863 = vtanh.f32 %v1897_v27 }
0x1287   :  { %v1785_v25 = vpop.permute.xlu1 %1784 }
0x1288   :  { %v1787_v26 = vadd.f32 %v1785_v25, %v1687_v10 }
0x128a   :  { %2865 = vtanh.f32 %v1787_v26 }
0x1290   :  { %v2864_v36 = vpop.eup %2863 }
0x1291   :  { %1901 = vrot.lane.b32.xlu0 %v2864_v36, %s3055_s19  ;;  %v2756_v36 = vpack.c.bf16 %v2166_v34, %v2165_v32 }
0x1294   :  { %v2866_v37 = vpop.eup %2865 }
0x1295   :  { %1791 = vrot.lane.b32.xlu1 %v2866_v37, %s3055_s19  ;;  %v2167_v37 = vld [vmem:[#allocation15 + $0x20] sm:$0xff] }
0x1296   :  { %v2760_v39 = vpack.c.bf16 %v2168_v38, %v2167_v37 }
0x1303   :  { %v1902_v43 = vpop.permute.xlu0 %1901 }
0x1304   :  { %v1904_v46 = vmul.f32 %v1902_v43, %v1899_v42  ;;  %v2169_v42 = vld [vmem:[#allocation15 + $0x30] sm:$0xff]  ;;  %v2170_v43 = vld [vmem:[#allocation15 + $0x38] sm:$0xff] }
0x1306   :  { %v1906_v47 = vadd.f32 %v1905_v45, %v1904_v46  ;;  %v2764_v45 = vpack.c.bf16 %v2170_v43, %v2169_v42 }
0x1307   :  { %v1792_v49 = vpop.permute.xlu1 %1791 }
0x1308   :  { %v1794_v51 = vmul.f32 %v1792_v49, %v1789_v48  ;;  %1913 = vrot.lane.b32.xlu0 %v1906_v47, %s3055_s19 }
0x130a   :  { %v1796_v0 = vadd.f32 %v1795_v50, %v1794_v51 }
0x130c   :  { %1908 = vrot.lane.b32.xlu1 %v1796_v0, %s3055_s19 }
0x137a   :  { %v1914_v52 = vpop.permute.xlu0 %1913 }
0x137b   :  { %1916 = vst.msk [vmem:[#allocation5 + $0x2] sm:$0x3] %vm530_vm3, %v1914_v52  ;;  %2619 = vmatmul.mubr.msk.f32.vlgmr.msra.gmra.mrb[18].mxu1 %vm134_vm1, %v1914_v52  ;;  %v2147_v52 = vld [vmem:[#allocation4] sm:$0xff] }
0x137e   :  { %v1909_v53 = vpop.permute.xlu1 %1908 }
0x137f   :  { %1911 = vst.msk [vmem:[#allocation4 + $0xc] sm:$0x3] %vm530_vm3, %v1909_v53  ;;  %2608 = vmatmul.mubr.msk.f32.vlgmr.msra.gmra.mrb[14].mxu0 %vm134_vm1, %v1909_v53 }
0x1380   :  { %2755 = vmatpush3.bf16.msra.mxu0 %v2752_v33 }
0x1381   :  { %2757 = vmatprep.subr.bf16.mxu0 %v2756_v36 }
0x1384   :  { %2759 = vmatpush3.bf16.msra.mxu0 %v2756_v36 }
0x1385   :  { %2761 = vmatprep.subr.bf16.mxu0 %v2760_v39 }
0x1388   :  { %2763 = vmatpush3.bf16.msra.mxu0 %v2760_v39 }
0x1389   :  { %2765 = vmatprep.subr.bf16.mxu0 %v2764_v45 }
0x138c   :  { %2767 = vmatpush3.bf16.msra.mxu0 %v2764_v45 }
0x144e   :  { %v2107_v55 = vpop.f32.mrb[18].mxu1 }
0x144f   :  { %v2108_v56 = vadd.f32 %v2316_v54, %v2107_v55  ;;  %v2620_v57 = vpop.f32.mrb[19].mxu1 }
0x1451   :  { %2119 = vrot.lane.b32.xlu0 %v2108_v56, %s3054_s7  ;;  %v2111_v63 = vadd.f32 %v2108_v56, %v2027_v62  ;;  %v2318_v56 = vld [vmem:[%s3543_s10] ss:$0 sm:$0xff] }
0x1452   :  { %v1997_v59 = vpop.f32.mrb[14].mxu0 }
0x1453   :  { %v1998_v60 = vadd.f32 %v2314_v58, %v1997_v59  ;;  %v2609_v61 = vpop.f32.mrb[15].mxu0  ;;  %v2112_v3 = vsub.f32 0.0, %v2111_v63 }
0x1455   :  { %2009 = vrot.lane.b32.xlu1 %v1998_v60, %s3054_s7  ;;  %v2001_v4 = vadd.f32 %v1998_v60, %v1917_v2  ;;  %v2113_v5 = vmul.f32 1.442695, %v2112_v3 }
0x1457   :  { %v2002_v6 = vsub.f32 0.0, %v2001_v4  ;;  %2867 = vpow2.f32 %v2113_v5 }
0x1459   :  { %v2003_v7 = vmul.f32 1.442695, %v2002_v6 }
0x145b   :  { %2869 = vpow2.f32 %v2003_v7 }
0x1461   :  { %v2868_v8 = vpop.eup %2867 }
0x1462   :  { %v2115_v9 = vadd.f32 1.0, %v2868_v8 }
0x1464   :  { %2871 = vrcp.f32 %v2115_v9 }
0x1465   :  { %v2870_v10 = vpop.eup %2869 }
0x1466   :  { %v2005_v11 = vadd.f32 1.0, %v2870_v10 }
0x1468   :  { %2873 = vrcp.f32 %v2005_v11 }
0x146e   :  { %v2872_v12 = vpop.eup %2871 }
0x146f   :  { %v2129_v22 = vsub.f32 1.0, %v2872_v12  ;;  %v2135_v13 = vmul.f32 %v2872_v12, %v1906_v47 }
0x1472   :  { %v2874_v1 = vpop.eup %2873 }
0x1473   :  { %v2019_v26 = vsub.f32 1.0, %v2874_v1  ;;  %v2025_v29 = vmul.f32 %v2874_v1, %v1796_v0 }
0x14c3   :  { %v2120_v14 = vpop.permute.xlu0 %2119 }
0x14c4   :  { %v2122_v15 = vmul.f32 %v2872_v12, %v2120_v14 }
0x14c6   :  { %2124 = vrot.lane.b32.xlu0 %v2122_v15, %s3054_s7 }
0x14c7   :  { %v2010_v40 = vpop.permute.xlu1 %2009 }
0x14c8   :  { %v2012_v16 = vmul.f32 %v2874_v1, %v2010_v40 }
0x14ca   :  { %2014 = vrot.lane.b32.xlu1 %v2012_v16, %s3054_s7 }
0x1538   :  { %v2125_v17 = vpop.permute.xlu0 %2124 }
0x1539   :  { %v2127_v18 = vadd.f32 %v2125_v17, %v2027_v62 }
0x153b   :  { %2875 = vtanh.f32 %v2127_v18 }
0x153c   :  { %v2015_v44 = vpop.permute.xlu1 %2014 }
0x153d   :  { %v2017_v20 = vadd.f32 %v2015_v44, %v1917_v2 }
0x153f   :  { %2877 = vtanh.f32 %v2017_v20 }
0x1545   :  { %v2876_v21 = vpop.eup %2875 }
0x1546   :  { %2131 = vrot.lane.b32.xlu0 %v2876_v21, %s3055_s19 }
0x1549   :  { %v2878_v24 = vpop.eup %2877 }
0x154a   :  { %2021 = vrot.lane.b32.xlu1 %v2878_v24, %s3055_s19 }
0x15b8   :  { %v2132_v23 = vpop.permute.xlu0 %2131 }
0x15b9   :  { %v2134_v27 = vmul.f32 %v2132_v23, %v2129_v22 }
0x15bb   :  { %v2136_v25 = vadd.f32 %v2135_v13, %v2134_v27 }
0x15bc   :  { %v2022_v28 = vpop.permute.xlu1 %2021 }
0x15bd   :  { %v2024_v30 = vmul.f32 %v2022_v28, %v2019_v26  ;;  %2143 = vrot.lane.b32.xlu0 %v2136_v25, %s3055_s19 }
0x15bf   :  { %v2026_v35 = vadd.f32 %v2025_v29, %v2024_v30 }
0x15c1   :  { %2138 = vrot.lane.b32.xlu1 %v2026_v35, %s3055_s19 }
0x15c5   :  { %2155 = vrot.lane.b32.xlu1 %v2150_v41, %s3056_s4 }
0x162f   :  { %v2144_v46 = vpop.permute.xlu0 %2143 }
0x1630   :  { %2146 = vst.msk [vmem:[#allocation5] sm:$0x3] %vm530_vm3, %v2144_v46 }
0x1633   :  { %v2139_v47 = vpop.permute.xlu1 %2138 }
0x1634   :  { %2141 = vst.msk [vmem:[#allocation4 + $0xe] sm:$0x3] %vm530_vm3, %v2139_v47 }
0x1637   :  { %v2149_v48 = vld [vmem:[#allocation5] sm:$0xff]  ;;  %v2156_v50 = vpop.permute.xlu1 %2155 }
0x1638   :  { %2153 = vrot.lane.b32.xlu0 %v2149_v48, %s3056_s4 }
0x163b   :  { %v2148_v49 = vld [vmem:[#allocation4 + $0x8] sm:$0xff] }
0x163c   :  { %v2160_v51 = vsel %vm134_vm1, %v2148_v49, %v2156_v50 }
0x163d   :  { %v2162_v55 = vmax.f32 %v2160_v51, 0.0 }
0x16aa   :  { %v2154_v0 = vpop.permute.xlu0 %2153 }
0x16ab   :  { %v2159_v53 = vsel %vm134_vm1, %v2147_v52, %v2154_v0 }
0x16ac   :  { %v2161_v54 = vmax.f32 %v2159_v53, 0.0 }
0x16ae   :  { %2637 = vmatprep.mubr.msk.f32.mxu0 %vm2178_vm4, %v2161_v54 }
0x16af   :  { %2638 = vmatmul.mubr.msk.f32.vlgmr.msra.gmra.mrb[16].mxu0 %vm2178_vm4, %v2162_v55 }
0x1782   :  { %v2639_v57 = vpop.f32.mrb[16].mxu0 }
0x1783   :  { %v2257_v58 = vadd.f32 %v2639_v57, %v2318_v56  ;;  %v2251_v59 = vpop.f32.mrb[17].mxu0 }
0x1784   :  { %v2252_v60 = vadd.f32 %v2318_v56, %v2251_v59 }
0x1785   :  { %2261 = vst [vmem:[#allocation17 + $0x8] sm:$0xff] %v2257_v58 }
0x1786   :  { %2260 = vst [vmem:[#allocation17] sm:$0xff] %v2252_v60 }
0x1787   :  { %3022 = shalt.err (!%p3019_p10)
}
0x1788   :  { %s3023_s10 = scalar_lea.hbm %s3544_s11, 256 }
0x1789   :  { %p3024_p11 = scmp.ne.s32.totalorder %s3544_s11, %s3023_s10  ;;  %p3027_p12 = scmp.lt.u32.totalorder %s3023_s10, %s3544_s11 }
0x178b   :  { %p3029_p13 = pnand %p3027_p12, %p3024_p11 }
0x178d   :  { %3032 = shalt.err (!%p3029_p13)
}
0x178e   :  { %2273 = dma.vmem_to_hbm [thread:$0]  %s2268_s18, 256, %s3544_s11, [#allocation8], %s3045_s29, %s3045_s29, %s3046_s30  }
0x178f   :  { %3041 = dma.done.wait [#allocation8], 256  }
0x1790   :  { %3042 = vsyncadd [#allocation8], 4294967040 }
0x1791   :  { %2277 = vsyncpa [#allocation7], 1 }
0x1792   :  { %2278 = vsyncpa [#allocation10], 1 }
0x1793   :  { %2279 = vsyncpa [#allocation13], 1 }
0x1794   :  { %2280 = vsyncpa [#allocation16], 1 }
0x1795   :  { %2281 = vsyncpa [#allocation8], 1 }

</bundles_post_ra>
